<compile_context>
chip_gen: v6e
topology: v6e:2x2x1
jax: 0.10.0
libtpu: 0.0.40
codegen_flags: <defaults>
</compile_context>

<pallas_src>
import jax
import jax.numpy as jnp
from jax.experimental import pallas as pl
from jax.experimental.pallas import tpu as pltpu

_LANE = 128


def _round_up(n, m):
    return ((n + m - 1) // m) * m


def _double_q_kernel(x_ref,
                     w11, b11, w12, b12, w13, b13, w14, b14,
                     w21, b21, w22, b22, w23, b23, w24, b24,
                     q1_ref, q2_ref):
    x = x_ref[...]  # (TB, IN_PAD) bf16

    def mlp(w1, b1, w2, b2, w3, b3, w4, b4):
        h = jnp.dot(x, w1[...], preferred_element_type=jnp.float32) + b1[...]
        h = jnp.maximum(h, 0.0).astype(x.dtype)
        h = jnp.dot(h, w2[...], preferred_element_type=jnp.float32) + b2[...]
        h = jnp.maximum(h, 0.0).astype(x.dtype)
        h = jnp.dot(h, w3[...], preferred_element_type=jnp.float32) + b3[...]
        h = jnp.maximum(h, 0.0).astype(x.dtype)
        # Final layer: weight zero-padded to (H, 128) -> full-lane store.
        return jnp.dot(h, w4[...], preferred_element_type=jnp.float32) + b4[...]

    q1_ref[...] = mlp(w11, b11, w12, b12, w13, b13, w14, b14).astype(q1_ref.dtype)
    q2_ref[...] = mlp(w21, b21, w22, b22, w23, b23, w24, b24).astype(q2_ref.dtype)


def init_double_q_params(key, state_dim, action_dim, hidden_size=256):
    """PyTorch-Linear-style init (uniform +/- 1/sqrt(fan_in)), two networks.

    Weights are stored transposed (in, out) so the kernel computes x @ W + b.
    """
    in_dim = state_dim + action_dim
    dims = [(in_dim, hidden_size), (hidden_size, hidden_size),
            (hidden_size, hidden_size), (hidden_size, 1)]
    nets = []
    for _ in range(2):
        layers = []
        for fan_in, fan_out in dims:
            key, kw, kb = jax.random.split(key, 3)
            bound = 1.0 / (float(fan_in) ** 0.5)
            w = jax.random.uniform(kw, (fan_in, fan_out), jnp.float32, -bound, bound)
            b = jax.random.uniform(kb, (1, fan_out), jnp.float32, -bound, bound)
            layers.append((w, b))
        nets.append(tuple(layers))
    return tuple(nets)


def _pad_net_for_kernel(net, in_pad, out_pad):
    """Zero-pad input rows of W1 and output columns of W4; bf16 weights."""
    (w1, b1), (w2, b2), (w3, b3), (w4, b4) = net
    in_dim, hidden = w1.shape
    w1p = jnp.zeros((in_pad, hidden), jnp.float32).at[:in_dim, :].set(w1)
    w4p = jnp.zeros((hidden, out_pad), jnp.float32).at[:, :w4.shape[1]].set(w4)
    b4p = jnp.zeros((1, out_pad), jnp.float32).at[:, :b4.shape[1]].set(b4)
    return (w1p.astype(jnp.bfloat16), b1,
            w2.astype(jnp.bfloat16), b2,
            w3.astype(jnp.bfloat16), b3,
            w4p.astype(jnp.bfloat16), b4p)


def double_q_forward(state, action, params, *, tb=128):
    """DoubleQFunc.forward as a single batch-gridded Pallas kernel."""
    x = jnp.concatenate([state, action], axis=1).astype(jnp.float32)
    b, in_dim = x.shape
    hidden = params[0][1][0].shape[0]        # W2 is (H, H)

    in_pad = _round_up(in_dim, _LANE)
    out_pad = _LANE
    tb_eff = min(tb, _round_up(b, 8))        # batch tile (multiple of 8)
    b_pad = _round_up(b, tb_eff)
    grid = (b_pad // tb_eff,)

    # Pad batch + feature dims; cast activations to bf16 for the MXU.
    xp = (jnp.zeros((b_pad, in_pad), jnp.float32)
          .at[:b, :in_dim].set(x).astype(jnp.bfloat16))

    flat_params = _pad_net_for_kernel(params[0], in_pad, out_pad) + \
                  _pad_net_for_kernel(params[1], in_pad, out_pad)

    # x is blocked over the batch; weights/biases are VMEM-resident (block
    # index (0, 0) for every grid step, full-array block shapes).
    x_spec = pl.BlockSpec((tb_eff, in_pad), lambda i: (i, 0))
    param_specs = [pl.BlockSpec(p.shape, lambda i: (0, 0)) for p in flat_params]
    out_spec = pl.BlockSpec((tb_eff, out_pad), lambda i: (i, 0))

    out_shape = (
        jax.ShapeDtypeStruct((b_pad, out_pad), jnp.float32),  # q1 (padded)
        jax.ShapeDtypeStruct((b_pad, out_pad), jnp.float32),  # q2 (padded)
    )

    flops = 2 * 2 * b_pad * (in_pad * hidden + 2 * hidden * hidden
                             + hidden * out_pad)
    bytes_accessed = (xp.size * xp.dtype.itemsize
                      + sum(p.size * p.dtype.itemsize for p in flat_params)
                      + 2 * b_pad * out_pad * 4)

    q1p, q2p = pl.pallas_call(
        _double_q_kernel,
        out_shape=out_shape,
        grid=grid,
        in_specs=[x_spec] + param_specs,
        out_specs=(out_spec, out_spec),
        compiler_params=pltpu.CompilerParams(
            dimension_semantics=("parallel",)),
        cost_estimate=pl.CostEstimate(
            flops=flops, transcendentals=0, bytes_accessed=bytes_accessed),
    )(xp, *flat_params)

    return q1p[:b, :1], q2p[:b, :1]


def _ref_forward(state, action, params):
    """Plain-JAX reference mirroring the kernel's bf16-matmul / f32-accum math."""
    x = jnp.concatenate([state, action], axis=1).astype(jnp.float32)
    outs = []
    for net in params:
        h = x
        for (w, b) in net[:-1]:
            h = jnp.dot(h.astype(jnp.bfloat16), w.astype(jnp.bfloat16),
                        preferred_element_type=jnp.float32) + b
            h = jnp.maximum(h, 0.0)
        w4, b4 = net[-1]
        q = jnp.dot(h.astype(jnp.bfloat16), w4.astype(jnp.bfloat16),
                    preferred_element_type=jnp.float32) + b4
        outs.append(q)
    return tuple(outs)


if __name__ == "__main__":
    # Small deterministic example consistent with DoubleQFunc(state, action).
    batch = 256
    state_dim = 17
    action_dim = 6
    hidden_size = 256  # module default; already lane-aligned (multiple of 128)

    root = jax.random.PRNGKey(0)
    k_params, k_state, k_action = jax.random.split(root, 3)

    params = init_double_q_params(k_params, state_dim, action_dim, hidden_size)
    state = jax.random.normal(k_state, (batch, state_dim), jnp.float32)
    action = jax.random.normal(k_action, (batch, action_dim), jnp.float32)

    q1, q2 = double_q_forward(state, action, params)
    jax.block_until_ready((q1, q2))

    r1, r2 = _ref_forward(state, action, params)
    assert q1.shape == (batch, 1) and q2.shape == (batch, 1)
    assert jnp.allclose(q1, r1, atol=1e-3, rtol=1e-3)
    assert jnp.allclose(q2, r2, atol=1e-3, rtol=1e-3)

    print("KERNEL_OK")
</pallas_src>

<mosaic_0001>
module attributes {stable_mosaic.version = 11 : i64} {
  func.func @_double_q_kernel(%arg0: i32, %arg1: memref<128x128xbf16, #tpu.memory_space<vmem>>, %arg2: memref<128x256xbf16, #tpu.memory_space<vmem>>, %arg3: memref<1x256xf32, #tpu.memory_space<vmem>>, %arg4: memref<256x256xbf16, #tpu.memory_space<vmem>>, %arg5: memref<1x256xf32, #tpu.memory_space<vmem>>, %arg6: memref<256x256xbf16, #tpu.memory_space<vmem>>, %arg7: memref<1x256xf32, #tpu.memory_space<vmem>>, %arg8: memref<256x128xbf16, #tpu.memory_space<vmem>>, %arg9: memref<1x128xf32, #tpu.memory_space<vmem>>, %arg10: memref<128x256xbf16, #tpu.memory_space<vmem>>, %arg11: memref<1x256xf32, #tpu.memory_space<vmem>>, %arg12: memref<256x256xbf16, #tpu.memory_space<vmem>>, %arg13: memref<1x256xf32, #tpu.memory_space<vmem>>, %arg14: memref<256x256xbf16, #tpu.memory_space<vmem>>, %arg15: memref<1x256xf32, #tpu.memory_space<vmem>>, %arg16: memref<256x128xbf16, #tpu.memory_space<vmem>>, %arg17: memref<1x128xf32, #tpu.memory_space<vmem>>, %arg18: memref<128x128xf32, #tpu.memory_space<vmem>>, %arg19: memref<128x128xf32, #tpu.memory_space<vmem>>) attributes {dimension_semantics = [#tpu.dimension_semantics<parallel>], iteration_bounds = array<i64: 2>, scalar_prefetch = 0 : i64, scratch_operands = 0 : i64, tpu.core_type = #tpu.core_type<tc>, window_params = [{transform_indices = @transform_0, window_bounds = array<i64: 128, 128>}, {pipeline_mode = #tpu.pipeline_mode<synchronous>, transform_indices = @transform_1, window_bounds = array<i64: 128, 256>}, {pipeline_mode = #tpu.pipeline_mode<synchronous>, transform_indices = @transform_2, window_bounds = array<i64: 1, 256>}, {pipeline_mode = #tpu.pipeline_mode<synchronous>, transform_indices = @transform_3, window_bounds = array<i64: 256, 256>}, {pipeline_mode = #tpu.pipeline_mode<synchronous>, transform_indices = @transform_4, window_bounds = array<i64: 1, 256>}, {pipeline_mode = #tpu.pipeline_mode<synchronous>, transform_indices = @transform_5, window_bounds = array<i64: 256, 256>}, {pipeline_mode = #tpu.pipeline_mode<synchronous>, transform_indices = @transform_6, window_bounds = array<i64: 1, 256>}, {pipeline_mode = #tpu.pipeline_mode<synchronous>, transform_indices = @transform_7, window_bounds = array<i64: 256, 128>}, {pipeline_mode = #tpu.pipeline_mode<synchronous>, transform_indices = @transform_8, window_bounds = array<i64: 1, 128>}, {pipeline_mode = #tpu.pipeline_mode<synchronous>, transform_indices = @transform_9, window_bounds = array<i64: 128, 256>}, {pipeline_mode = #tpu.pipeline_mode<synchronous>, transform_indices = @transform_10, window_bounds = array<i64: 1, 256>}, {pipeline_mode = #tpu.pipeline_mode<synchronous>, transform_indices = @transform_11, window_bounds = array<i64: 256, 256>}, {pipeline_mode = #tpu.pipeline_mode<synchronous>, transform_indices = @transform_12, window_bounds = array<i64: 1, 256>}, {pipeline_mode = #tpu.pipeline_mode<synchronous>, transform_indices = @transform_13, window_bounds = array<i64: 256, 256>}, {pipeline_mode = #tpu.pipeline_mode<synchronous>, transform_indices = @transform_14, window_bounds = array<i64: 1, 256>}, {pipeline_mode = #tpu.pipeline_mode<synchronous>, transform_indices = @transform_15, window_bounds = array<i64: 256, 128>}, {pipeline_mode = #tpu.pipeline_mode<synchronous>, transform_indices = @transform_16, window_bounds = array<i64: 1, 128>}, {transform_indices = @transform_17, window_bounds = array<i64: 128, 128>}, {transform_indices = @transform_18, window_bounds = array<i64: 128, 128>}]} {
    %c0 = arith.constant 0 : index
    %c0_0 = arith.constant 0 : index
    %0 = vector.load %arg1[%c0, %c0_0] : memref<128x128xbf16, #tpu.memory_space<vmem>>, vector<128x128xbf16>
    %c0_1 = arith.constant 0 : index
    %c0_2 = arith.constant 0 : index
    %1 = vector.load %arg2[%c0_1, %c0_2] : memref<128x256xbf16, #tpu.memory_space<vmem>>, vector<128x256xbf16>
    %cst = arith.constant dense<0.000000e+00> : vector<128x256xf32>
    %2 = tpu.matmul %0, %1, %cst {dimension_numbers = #tpu.dot_dimension_numbers<[1], [0], [0], [1], [0, 0, 1, 1], [], []>} : vector<128x128xbf16>, vector<128x256xbf16>, vector<128x256xf32> -> vector<128x256xf32>
    %c0_3 = arith.constant 0 : index
    %c0_4 = arith.constant 0 : index
    %3 = vector.load %arg3[%c0_3, %c0_4] : memref<1x256xf32, #tpu.memory_space<vmem>>, vector<1x256xf32>
    %4 = vector.broadcast %3 : vector<1x256xf32> to vector<128x256xf32>
    %5 = arith.addf %2, %4 : vector<128x256xf32>
    %cst_5 = arith.constant 0.000000e+00 : f32
    %6 = vector.broadcast %cst_5 : f32 to vector<128x256xf32>
    %7 = arith.maximumf %5, %6 : vector<128x256xf32>
    %8 = arith.truncf %7 : vector<128x256xf32> to vector<128x256xbf16>
    %c0_6 = arith.constant 0 : index
    %c0_7 = arith.constant 0 : index
    %9 = vector.load %arg4[%c0_6, %c0_7] : memref<256x256xbf16, #tpu.memory_space<vmem>>, vector<256x256xbf16>
    %cst_8 = arith.constant dense<0.000000e+00> : vector<128x256xf32>
    %10 = tpu.matmul %8, %9, %cst_8 {dimension_numbers = #tpu.dot_dimension_numbers<[1], [0], [0], [1], [0, 0, 1, 1], [], []>} : vector<128x256xbf16>, vector<256x256xbf16>, vector<128x256xf32> -> vector<128x256xf32>
    %c0_9 = arith.constant 0 : index
    %c0_10 = arith.constant 0 : index
    %11 = vector.load %arg5[%c0_9, %c0_10] : memref<1x256xf32, #tpu.memory_space<vmem>>, vector<1x256xf32>
    %12 = vector.broadcast %11 : vector<1x256xf32> to vector<128x256xf32>
    %13 = arith.addf %10, %12 : vector<128x256xf32>
    %cst_11 = arith.constant 0.000000e+00 : f32
    %14 = vector.broadcast %cst_11 : f32 to vector<128x256xf32>
    %15 = arith.maximumf %13, %14 : vector<128x256xf32>
    %16 = arith.truncf %15 : vector<128x256xf32> to vector<128x256xbf16>
    %c0_12 = arith.constant 0 : index
    %c0_13 = arith.constant 0 : index
    %17 = vector.load %arg6[%c0_12, %c0_13] : memref<256x256xbf16, #tpu.memory_space<vmem>>, vector<256x256xbf16>
    %cst_14 = arith.constant dense<0.000000e+00> : vector<128x256xf32>
    %18 = tpu.matmul %16, %17, %cst_14 {dimension_numbers = #tpu.dot_dimension_numbers<[1], [0], [0], [1], [0, 0, 1, 1], [], []>} : vector<128x256xbf16>, vector<256x256xbf16>, vector<128x256xf32> -> vector<128x256xf32>
    %c0_15 = arith.constant 0 : index
    %c0_16 = arith.constant 0 : index
    %19 = vector.load %arg7[%c0_15, %c0_16] : memref<1x256xf32, #tpu.memory_space<vmem>>, vector<1x256xf32>
    %20 = vector.broadcast %19 : vector<1x256xf32> to vector<128x256xf32>
    %21 = arith.addf %18, %20 : vector<128x256xf32>
    %cst_17 = arith.constant 0.000000e+00 : f32
    %22 = vector.broadcast %cst_17 : f32 to vector<128x256xf32>
    %23 = arith.maximumf %21, %22 : vector<128x256xf32>
    %24 = arith.truncf %23 : vector<128x256xf32> to vector<128x256xbf16>
    %c0_18 = arith.constant 0 : index
    %c0_19 = arith.constant 0 : index
    %25 = vector.load %arg8[%c0_18, %c0_19] : memref<256x128xbf16, #tpu.memory_space<vmem>>, vector<256x128xbf16>
    %cst_20 = arith.constant dense<0.000000e+00> : vector<128x128xf32>
    %26 = tpu.matmul %24, %25, %cst_20 {dimension_numbers = #tpu.dot_dimension_numbers<[1], [0], [0], [1], [0, 0, 1, 1], [], []>} : vector<128x256xbf16>, vector<256x128xbf16>, vector<128x128xf32> -> vector<128x128xf32>
    %c0_21 = arith.constant 0 : index
    %c0_22 = arith.constant 0 : index
    %27 = vector.load %arg9[%c0_21, %c0_22] : memref<1x128xf32, #tpu.memory_space<vmem>>, vector<1x128xf32>
    %28 = vector.broadcast %27 : vector<1x128xf32> to vector<128x128xf32>
    %29 = arith.addf %26, %28 : vector<128x128xf32>
    %c0_23 = arith.constant 0 : index
    %c0_24 = arith.constant 0 : index
    %30 = vector.load %arg18[%c0_23, %c0_24] : memref<128x128xf32, #tpu.memory_space<vmem>>, vector<128x128xf32>
    tpu.vector_store %arg18[%c0_23, %c0_24], %29 {strides = array<i32>} : memref<128x128xf32, #tpu.memory_space<vmem>>, vector<128x128xf32>,
    %c0_25 = arith.constant 0 : index
    %c0_26 = arith.constant 0 : index
    %31 = vector.load %arg10[%c0_25, %c0_26] : memref<128x256xbf16, #tpu.memory_space<vmem>>, vector<128x256xbf16>
    %cst_27 = arith.constant dense<0.000000e+00> : vector<128x256xf32>
    %32 = tpu.matmul %0, %31, %cst_27 {dimension_numbers = #tpu.dot_dimension_numbers<[1], [0], [0], [1], [0, 0, 1, 1], [], []>} : vector<128x128xbf16>, vector<128x256xbf16>, vector<128x256xf32> -> vector<128x256xf32>
    %c0_28 = arith.constant 0 : index
    %c0_29 = arith.constant 0 : index
    %33 = vector.load %arg11[%c0_28, %c0_29] : memref<1x256xf32, #tpu.memory_space<vmem>>, vector<1x256xf32>
    %34 = vector.broadcast %33 : vector<1x256xf32> to vector<128x256xf32>
    %35 = arith.addf %32, %34 : vector<128x256xf32>
    %cst_30 = arith.constant 0.000000e+00 : f32
    %36 = vector.broadcast %cst_30 : f32 to vector<128x256xf32>
    %37 = arith.maximumf %35, %36 : vector<128x256xf32>
    %38 = arith.truncf %37 : vector<128x256xf32> to vector<128x256xbf16>
    %c0_31 = arith.constant 0 : index
    %c0_32 = arith.constant 0 : index
    %39 = vector.load %arg12[%c0_31, %c0_32] : memref<256x256xbf16, #tpu.memory_space<vmem>>, vector<256x256xbf16>
    %cst_33 = arith.constant dense<0.000000e+00> : vector<128x256xf32>
    %40 = tpu.matmul %38, %39, %cst_33 {dimension_numbers = #tpu.dot_dimension_numbers<[1], [0], [0], [1], [0, 0, 1, 1], [], []>} : vector<128x256xbf16>, vector<256x256xbf16>, vector<128x256xf32> -> vector<128x256xf32>
    %c0_34 = arith.constant 0 : index
    %c0_35 = arith.constant 0 : index
    %41 = vector.load %arg13[%c0_34, %c0_35] : memref<1x256xf32, #tpu.memory_space<vmem>>, vector<1x256xf32>
    %42 = vector.broadcast %41 : vector<1x256xf32> to vector<128x256xf32>
    %43 = arith.addf %40, %42 : vector<128x256xf32>
    %cst_36 = arith.constant 0.000000e+00 : f32
    %44 = vector.broadcast %cst_36 : f32 to vector<128x256xf32>
    %45 = arith.maximumf %43, %44 : vector<128x256xf32>
    %46 = arith.truncf %45 : vector<128x256xf32> to vector<128x256xbf16>
    %c0_37 = arith.constant 0 : index
    %c0_38 = arith.constant 0 : index
    %47 = vector.load %arg14[%c0_37, %c0_38] : memref<256x256xbf16, #tpu.memory_space<vmem>>, vector<256x256xbf16>
    %cst_39 = arith.constant dense<0.000000e+00> : vector<128x256xf32>
    %48 = tpu.matmul %46, %47, %cst_39 {dimension_numbers = #tpu.dot_dimension_numbers<[1], [0], [0], [1], [0, 0, 1, 1], [], []>} : vector<128x256xbf16>, vector<256x256xbf16>, vector<128x256xf32> -> vector<128x256xf32>
    %c0_40 = arith.constant 0 : index
    %c0_41 = arith.constant 0 : index
    %49 = vector.load %arg15[%c0_40, %c0_41] : memref<1x256xf32, #tpu.memory_space<vmem>>, vector<1x256xf32>
    %50 = vector.broadcast %49 : vector<1x256xf32> to vector<128x256xf32>
    %51 = arith.addf %48, %50 : vector<128x256xf32>
    %cst_42 = arith.constant 0.000000e+00 : f32
    %52 = vector.broadcast %cst_42 : f32 to vector<128x256xf32>
    %53 = arith.maximumf %51, %52 : vector<128x256xf32>
    %54 = arith.truncf %53 : vector<128x256xf32> to vector<128x256xbf16>
    %c0_43 = arith.constant 0 : index
    %c0_44 = arith.constant 0 : index
    %55 = vector.load %arg16[%c0_43, %c0_44] : memref<256x128xbf16, #tpu.memory_space<vmem>>, vector<256x128xbf16>
    %cst_45 = arith.constant dense<0.000000e+00> : vector<128x128xf32>
    %56 = tpu.matmul %54, %55, %cst_45 {dimension_numbers = #tpu.dot_dimension_numbers<[1], [0], [0], [1], [0, 0, 1, 1], [], []>} : vector<128x256xbf16>, vector<256x128xbf16>, vector<128x128xf32> -> vector<128x128xf32>
    %c0_46 = arith.constant 0 : index
    %c0_47 = arith.constant 0 : index
    %57 = vector.load %arg17[%c0_46, %c0_47] : memref<1x128xf32, #tpu.memory_space<vmem>>, vector<1x128xf32>
    %58 = vector.broadcast %57 : vector<1x128xf32> to vector<128x128xf32>
    %59 = arith.addf %56, %58 : vector<128x128xf32>
    %c0_48 = arith.constant 0 : index
    %c0_49 = arith.constant 0 : index
    %60 = vector.load %arg19[%c0_48, %c0_49] : memref<128x128xf32, #tpu.memory_space<vmem>>, vector<128x128xf32>
    tpu.vector_store %arg19[%c0_48, %c0_49], %59 {strides = array<i32>} : memref<128x128xf32, #tpu.memory_space<vmem>>, vector<128x128xf32>,
    return
  }
  func.func @transform_0(%arg0: i32) -> (i32, i32) {
    %c0_i32 = arith.constant 0 : i32
    %c0_i32_0 = arith.constant 0 : i32
    return %arg0, %c0_i32 : i32, i32
  }
  func.func @transform_1(%arg0: i32) -> (i32, i32) {
    %c0_i32 = arith.constant 0 : i32
    %c0_i32_0 = arith.constant 0 : i32
    %c0_i32_1 = arith.constant 0 : i32
    return %c0_i32, %c0_i32_0 : i32, i32
  }
  func.func @transform_2(%arg0: i32) -> (i32, i32) {
    %c0_i32 = arith.constant 0 : i32
    %c0_i32_0 = arith.constant 0 : i32
    %c0_i32_1 = arith.constant 0 : i32
    return %c0_i32, %c0_i32_0 : i32, i32
  }
  func.func @transform_3(%arg0: i32) -> (i32, i32) {
    %c0_i32 = arith.constant 0 : i32
    %c0_i32_0 = arith.constant 0 : i32
    %c0_i32_1 = arith.constant 0 : i32
    return %c0_i32, %c0_i32_0 : i32, i32
  }
  func.func @transform_4(%arg0: i32) -> (i32, i32) {
    %c0_i32 = arith.constant 0 : i32
    %c0_i32_0 = arith.constant 0 : i32
    %c0_i32_1 = arith.constant 0 : i32
    return %c0_i32, %c0_i32_0 : i32, i32
  }
  func.func @transform_5(%arg0: i32) -> (i32, i32) {
    %c0_i32 = arith.constant 0 : i32
    %c0_i32_0 = arith.constant 0 : i32
    %c0_i32_1 = arith.constant 0 : i32
    return %c0_i32, %c0_i32_0 : i32, i32
  }
  func.func @transform_6(%arg0: i32) -> (i32, i32) {
    %c0_i32 = arith.constant 0 : i32
    %c0_i32_0 = arith.constant 0 : i32
    %c0_i32_1 = arith.constant 0 : i32
    return %c0_i32, %c0_i32_0 : i32, i32
  }
  func.func @transform_7(%arg0: i32) -> (i32, i32) {
    %c0_i32 = arith.constant 0 : i32
    %c0_i32_0 = arith.constant 0 : i32
    %c0_i32_1 = arith.constant 0 : i32
    return %c0_i32, %c0_i32_0 : i32, i32
  }
  func.func @transform_8(%arg0: i32) -> (i32, i32) {
    %c0_i32 = arith.constant 0 : i32
    %c0_i32_0 = arith.constant 0 : i32
    %c0_i32_1 = arith.constant 0 : i32
    return %c0_i32, %c0_i32_0 : i32, i32
  }
  func.func @transform_9(%arg0: i32) -> (i32, i32) {
    %c0_i32 = arith.constant 0 : i32
    %c0_i32_0 = arith.constant 0 : i32
    %c0_i32_1 = arith.constant 0 : i32
    return %c0_i32, %c0_i32_0 : i32, i32
  }
  func.func @transform_10(%arg0: i32) -> (i32, i32) {
    %c0_i32 = arith.constant 0 : i32
    %c0_i32_0 = arith.constant 0 : i32
    %c0_i32_1 = arith.constant 0 : i32
    return %c0_i32, %c0_i32_0 : i32, i32
  }
  func.func @transform_11(%arg0: i32) -> (i32, i32) {
    %c0_i32 = arith.constant 0 : i32
    %c0_i32_0 = arith.constant 0 : i32
    %c0_i32_1 = arith.constant 0 : i32
    return %c0_i32, %c0_i32_0 : i32, i32
  }
  func.func @transform_12(%arg0: i32) -> (i32, i32) {
    %c0_i32 = arith.constant 0 : i32
    %c0_i32_0 = arith.constant 0 : i32
    %c0_i32_1 = arith.constant 0 : i32
    return %c0_i32, %c0_i32_0 : i32, i32
  }
  func.func @transform_13(%arg0: i32) -> (i32, i32) {
    %c0_i32 = arith.constant 0 : i32
    %c0_i32_0 = arith.constant 0 : i32
    %c0_i32_1 = arith.constant 0 : i32
    return %c0_i32, %c0_i32_0 : i32, i32
  }
  func.func @transform_14(%arg0: i32) -> (i32, i32) {
    %c0_i32 = arith.constant 0 : i32
    %c0_i32_0 = arith.constant 0 : i32
    %c0_i32_1 = arith.constant 0 : i32
    return %c0_i32, %c0_i32_0 : i32, i32
  }
  func.func @transform_15(%arg0: i32) -> (i32, i32) {
    %c0_i32 = arith.constant 0 : i32
    %c0_i32_0 = arith.constant 0 : i32
    %c0_i32_1 = arith.constant 0 : i32
    return %c0_i32, %c0_i32_0 : i32, i32
  }
  func.func @transform_16(%arg0: i32) -> (i32, i32) {
    %c0_i32 = arith.constant 0 : i32
    %c0_i32_0 = arith.constant 0 : i32
    %c0_i32_1 = arith.constant 0 : i32
    return %c0_i32, %c0_i32_0 : i32, i32
  }
  func.func @transform_17(%arg0: i32) -> (i32, i32) {
    %c0_i32 = arith.constant 0 : i32
    %c0_i32_0 = arith.constant 0 : i32
    return %arg0, %c0_i32 : i32, i32
  }
  func.func @transform_18(%arg0: i32) -> (i32, i32) {
    %c0_i32 = arith.constant 0 : i32
    %c0_i32_0 = arith.constant 0 : i32
    return %arg0, %c0_i32 : i32, i32
  }
}

</mosaic_0001>

<bundles_post_ra>
// kernel: tpu_custom_call.1
= control target key start
LH: loop header
LB: loop body
LE: loop exit
PB: predicated region body
PF: predicated region fallthrough
CT: control target
= control target key end

     0   :  { %s5506_s0 = inlined_call_operand.hbm [shape: bf16[256,128], index: 0, kind: input, shape index: {}]   ;;  %s5507_s1 = inlined_call_operand.hbm [shape: bf16[128,256], index: 1, kind: input, shape index: {}]   ;;  %s5508_s2 = inlined_call_operand.vmem [shape: f32[1,256], index: 2, kind: input, shape index: {}]   ;;  %s5509_s3 = inlined_call_operand.hbm [shape: bf16[256,256], index: 3, kind: input, shape index: {}]   ;;  %s5510_s4 = inlined_call_operand.vmem [shape: f32[1,256], index: 4, kind: input, shape index: {}]   ;;  %s5511_s5 = inlined_call_operand.hbm [shape: bf16[256,256], index: 5, kind: input, shape index: {}]   ;;  %s5512_s6 = inlined_call_operand.vmem [shape: f32[1,256], index: 6, kind: input, shape index: {}]   ;;  %s5513_s7 = inlined_call_operand.hbm [shape: bf16[256,128], index: 7, kind: input, shape index: {}]   ;;  %s5514_s8 = inlined_call_operand.vmem [shape: f32[1,128], index: 8, kind: input, shape index: {}]   ;;  %s5515_s9 = inlined_call_operand.hbm [shape: bf16[128,256], index: 9, kind: input, shape index: {}]   ;;  %s5516_s10 = inlined_call_operand.vmem [shape: f32[1,256], index: 10, kind: input, shape index: {}]   ;;  %s5517_s11 = inlined_call_operand.hbm [shape: bf16[256,256], index: 11, kind: input, shape index: {}]   ;;  %s5518_s12 = inlined_call_operand.vmem [shape: f32[1,256], index: 12, kind: input, shape index: {}]   ;;  %s5519_s13 = inlined_call_operand.hbm [shape: bf16[256,256], index: 13, kind: input, shape index: {}]   ;;  %s5520_s14 = inlined_call_operand.vmem [shape: f32[1,256], index: 14, kind: input, shape index: {}]   ;;  %s5521_s15 = inlined_call_operand.hbm [shape: bf16[256,128], index: 15, kind: input, shape index: {}]   ;;  %s5522_s16 = inlined_call_operand.vmem [shape: f32[1,128], index: 16, kind: input, shape index: {}]   ;;  %s5523_s17 = inlined_call_operand.hbm [shape: f32[256,128], index: 17, kind: output, shape index: {0}]   ;;  %s5524_s18 = inlined_call_operand.hbm [shape: f32[256,128], index: 18, kind: output, shape index: {1}]  }
   0x1   :  { %5537 = sst [smem:[#allocation27_spill]] %s5506_s0 }
   0x2   :  { %5538 = sst [smem:[#allocation28_spill]] %s5507_s1 }
   0x3   :  { %5539 = sst [smem:[#allocation29_spill]] %s5508_s2 }
   0x4   :  { %5540 = sst [smem:[#allocation30_spill]] %s5509_s3 }
   0x5   :  { %5541 = sst [smem:[#allocation31_spill]] %s5511_s5 }
   0x6   :  { %5542 = sst [smem:[#allocation32_spill]] %s5513_s7 }
   0x7   :  { %5543 = sst [smem:[#allocation33_spill]] %s5515_s9 }
   0x8   :  { %5544 = sst [smem:[#allocation34_spill]] %s5517_s11 }
   0x9   :  { %5545 = sst [smem:[#allocation35_spill]] %s5519_s13 }
   0xa   :  { %5546 = sst [smem:[#allocation36_spill]] %s5521_s15 }
   0xb   :  { %5547 = sst [smem:[#allocation37_spill]] %s5522_s16 }
   0xc   :  { %5548 = sst [smem:[#allocation38_spill]] %s5523_s17 }
   0xd   :  { %5549 = sst [smem:[#allocation39_spill]] %s5524_s18 }
   0xe   :  { %24 = vsyncpa [#allocation3], 0 }
   0xf   :  { %26 = vsyncpa [#allocation3 + $0x1], 0 }
  0x10   :  { %27 = vsyncpa [#allocation6], 0 }
  0x11   :  { %28 = vsyncpa [#allocation9], 0 }
  0x12   :  { %29 = vsyncpa [#allocation12], 0 }
  0x13   :  { %30 = vsyncpa [#allocation15], 0 }
  0x14   :  { %31 = vsyncpa [#allocation4], 0 }
  0x15   :  { %33 = vsyncpa [#allocation4 + $0x1], 0 }
  0x16   :  { %34 = vsyncpa [#allocation19], 0 }
  0x17   :  { %36 = vsyncpa [#allocation19 + $0x1], 0  ;;  %s4768_s27 = smov 0   ;;  %s4770_s28 = smov 0  }
  0x18   :  { %s4772_s29 = smov 0   ;;  %s4774_s30 = smov 0  }
  0x19 LB: > { %s4655_s0 = smov [#allocation5]   ;;  %s4789_s1 = sadd.s32 4294967295, %s4653_s30   ;;  %s4653_s30 = sphi %s4774_s30, %s5592_s30   ;;  %s4649_s29 = sphi %s4772_s29, %s5591_s29   ;;  %s4645_s28 = sphi %s4770_s28, %s5590_s28   ;;  %s4641_s27 = sphi %s4768_s27, %s5589_s27  }
  0x1a   : > { %s473_s19 = sshll.u32 %s4655_s0, 4  ;;  %p3500_p0 = scmp.ge.s32.totalorder %s4653_s30, 1  ;;  %s474_s19 = int_to_ptr.vmem [resolvable:$true] %s473_s19 }
  0x1b   : > { %p5532_p1 = scmp.eq.s32.totalorder %s4789_s1, 0  ;;  %p461_p2 = scmp.lt.s32.totalorder %s4653_s30, 3 }
  0x1c   : > { %s4656_s21 = smov [#allocation8]   ;;  %s4657_s23 = smov [#allocation11]  }
  0x1d   : > { %p4794_p3 = pnand %p3500_p0, %p461_p2  ;;  %s505_s22 = sshll.u32 %s4656_s21, 4  ;;  %s4807_s22 = int_to_ptr.vmem [resolvable:$true] %s505_s22 }
  0x1e   : > { %s537_s24 = sshll.u32 %s4657_s23, 4  ;;  %s4318_s26 = scalar_lea.vmem %s474_s19, 2048  ;;  %s4809_s24 = int_to_ptr.vmem [resolvable:$true] %s537_s24 }
  0x1f   : > { %s5550_s20 = scalar_select %p4794_p3, 1, 0 }
  0x20   : > { %p3920_p5 = pneg %p4794_p3  ;;  %p4319_p8 = scmp.ne.s32.totalorder %s474_s19, %s4318_s26 }
  0x21   : > { %p4326_p11 = scmp.lt.s32.totalorder %s474_s19, %s474_s19  ;;  %p4327_p12 = scmp.lt.s32.totalorder %s4318_s26, %s4318_s26 }
  0x22   : > { %p4803_p6 = pnand %p3920_p5, %p5532_p1 }
  0x23   : > { %p4328_p13 = por %p4327_p12, %p4326_p11 }
  0x24   : > { %p4813_p7 = pneg %p4803_p6 }
  0x26   : > { %p4321_p9 = pnand %p4319_p8, %p4813_p7 }
  0x28   : > { %p4322_p10 = pneg %p4321_p9 }
  0x2a   : > { %p4329_p0 = pnand %p4328_p13, %p4322_p10 }
  0x2c   : > { %4332 = shalt.err (!%p4329_p0)
}
  0x2d   : > { %s5528_s0 = smov 128   ;;  %s5529_s21 = smov 8  }
  0x2e   : > { %s5553_s16 = sld [smem:[#allocation28_spill]]  ;;  %s4344_s17 = scalar_lea.vmem %s4807_s22, 4096 }
  0x2f   : > { %p4345_p2 = scmp.ne.s32.totalorder %s4807_s22, %s4344_s17  ;;  %p4352_p9 = scmp.lt.s32.totalorder %s4807_s22, %s4807_s22 }
  0x30   : > { %p4353_p10 = scmp.lt.s32.totalorder %s4344_s17, %s4344_s17 }
  0x31   : > { %p4347_p5 = pnand %p4345_p2, %p4813_p7 }
  0x32   : > { %p4354_p11 = por %p4353_p10, %p4352_p9 }
  0x33   : > { %p4348_p8 = pneg %p4347_p5 }
  0x34   : > { %3923 = dma.hbm_to_vmem [thread:$0]  (!%p4803_p6), %s5553_s16, 2048, %s474_s19, [#allocation6], %s5528_s0, %s5528_s0, %s5529_s21  }
  0x35   : > { %p4355_p12 = pnand %p4354_p11, %p4348_p8 }
  0x37   : > { %4358 = shalt.err (!%p4355_p12)
}
  0x38   : > { %s5554_s5 = sld [smem:[#allocation31_spill]]  ;;  %s4370_s16 = scalar_lea.vmem %s4809_s24, 2048 }
  0x39   : > { %p4371_p13 = scmp.ne.s32.totalorder %s4809_s24, %s4370_s16  ;;  %p4378_p5 = scmp.lt.s32.totalorder %s4809_s24, %s4809_s24 }
  0x3a   : > { %p4379_p8 = scmp.lt.s32.totalorder %s4370_s16, %s4370_s16 }
  0x3b   : > { %p4373_p0 = pnand %p4371_p13, %p4813_p7 }
  0x3c   : > { %p4380_p9 = por %p4379_p8, %p4378_p5 }
  0x3d   : > { %p4374_p2 = pneg %p4373_p0 }
  0x3e   : > { %3929 = dma.hbm_to_vmem [thread:$0]  (!%p4803_p6), %s5554_s5, 4096, %s4807_s22, [#allocation9], %s5528_s0, %s5528_s0, %s5529_s21  }
  0x3f   : > { %p4381_p10 = pnand %p4380_p9, %p4374_p2 }
  0x41   : > { %4384 = shalt.err (!%p4381_p10)
}
  0x42   : > { %s5555_s9 = sld [smem:[#allocation33_spill]]  ;;  %s4660_s22 = smov [#allocation14]  }
  0x43   : > { %s569_s23 = sshll.u32 %s4660_s22, 4  ;;  %s4661_s26 = smov [#allocation7]   ;;  %s570_s23 = int_to_ptr.vmem [resolvable:$true] %s569_s23 }
  0x44   : > { %s489_s18 = sshll.u32 %s4661_s26, 4  ;;  %s4396_s16 = scalar_lea.vmem %s570_s23, 4096  ;;  %s490_s18 = int_to_ptr.vmem [resolvable:$true] %s489_s18 }
  0x45   : > { %p4397_p11 = scmp.ne.s32.totalorder %s570_s23, %s4396_s16  ;;  %p4404_p0 = scmp.lt.s32.totalorder %s570_s23, %s570_s23 }
  0x46   : > { %p4405_p2 = scmp.lt.s32.totalorder %s4396_s16, %s4396_s16 }
  0x47   : > { %p4399_p12 = pnand %p4397_p11, %p4813_p7 }
  0x48   : > { %3935 = dma.hbm_to_vmem [thread:$0]  (!%p4803_p6), %s5555_s9, 2048, %s4809_s24, [#allocation12], %s5528_s0, %s5528_s0, %s5529_s21  }
  0x49   : > { %p4400_p13 = pneg %p4399_p12  ;;  %p4406_p5 = por %p4405_p2, %p4404_p0 }
  0x4b   : > { %p4407_p8 = pnand %p4406_p5, %p4400_p13 }
  0x4d   : > { %4410 = shalt.err (!%p4407_p8)
}
  0x4e   : > { %s5556_s13 = sld [smem:[#allocation35_spill]]  ;;  %s4422_s19 = scalar_lea.vmem %s490_s18, 4096 }
  0x4f   : > { %p4423_p9 = scmp.ne.s32.totalorder %s490_s18, %s4422_s19  ;;  %p4430_p12 = scmp.lt.s32.totalorder %s490_s18, %s490_s18 }
  0x50   : > { %p4431_p0 = scmp.lt.s32.totalorder %s4422_s19, %s4422_s19 }
  0x51   : > { %p4425_p10 = pnand %p4423_p9, %p4813_p7 }
  0x52   : > { %p4432_p13 = por %p4431_p0, %p4430_p12 }
  0x53   : > { %p4426_p11 = pneg %p4425_p10 }
  0x54   : > { %3941 = dma.hbm_to_vmem [thread:$0]  (!%p4803_p6), %s5556_s13, 4096, %s570_s23, [#allocation15], %s5528_s0, %s5528_s0, %s5529_s21  }
  0x55   : > { %p4433_p2 = pnand %p4432_p13, %p4426_p11 }
  0x57   : > { %4436 = shalt.err (!%p4433_p2)
}
  0x58   : > { %s5557_s3 = sld [smem:[#allocation30_spill]]  ;;  %s4662_s23 = smov [#allocation10]  }
  0x59   : > { %s521_s16 = sshll.u32 %s4662_s23, 4  ;;  %s522_s16 = int_to_ptr.vmem [resolvable:$true] %s521_s16 }
  0x5a   : > { %s4448_s24 = scalar_lea.vmem %s522_s16, 2048  ;;  %p4456_p10 = scmp.lt.s32.totalorder %s522_s16, %s522_s16 }
  0x5b   : > { %p4449_p5 = scmp.ne.s32.totalorder %s522_s16, %s4448_s24  ;;  %p4457_p11 = scmp.lt.s32.totalorder %s4448_s24, %s4448_s24 }
  0x5d   : > { %p4451_p8 = pnand %p4449_p5, %p4813_p7  ;;  %p4458_p12 = por %p4457_p11, %p4456_p10 }
  0x5e   : > { %3926 = dma.hbm_to_vmem [thread:$0]  (!%p4803_p6), %s5557_s3, 4096, %s490_s18, [#allocation6], %s5528_s0, %s5528_s0, %s5529_s21  }
  0x5f   : > { %p4452_p9 = pneg %p4451_p8 }
  0x61   : > { %p4459_p0 = pnand %p4458_p12, %p4452_p9 }
  0x63   : > { %4462 = shalt.err (!%p4459_p0)
}
  0x64   : > { %s5530_s17 = smov 64   ;;  %s5531_s19 = smov 4  }
  0x65   : > { %s5558_s7 = sld [smem:[#allocation32_spill]]  ;;  %s4665_s26 = smov [#allocation13]  }
  0x66   : > { %s553_s23 = sshll.u32 %s4665_s26, 4  ;;  %s4666_s0 = smov [#allocation16]   ;;  %s554_s23 = int_to_ptr.vmem [resolvable:$true] %s553_s23 }
  0x67   : > { %s585_s21 = sshll.u32 %s4666_s0, 4  ;;  %s4474_s24 = scalar_lea.vmem %s554_s23, 4096  ;;  %s586_s21 = int_to_ptr.vmem [resolvable:$true] %s585_s21 }
  0x68   : > { %p4475_p13 = scmp.ne.s32.totalorder %s554_s23, %s4474_s24  ;;  %p4482_p8 = scmp.lt.s32.totalorder %s554_s23, %s554_s23 }
  0x69   : > { %p4483_p9 = scmp.lt.s32.totalorder %s4474_s24, %s4474_s24 }
  0x6a   : > { %p4477_p2 = pnand %p4475_p13, %p4813_p7 }
  0x6b   : > { %3932 = dma.hbm_to_vmem [thread:$0]  (!%p4803_p6), %s5558_s7, 2048, %s522_s16, [#allocation9], %s5530_s17, %s5530_s17, %s5531_s19  }
  0x6c   : > { %p4478_p5 = pneg %p4477_p2  ;;  %p4484_p10 = por %p4483_p9, %p4482_p8 }
  0x6e   : > { %p4485_p11 = pnand %p4484_p10, %p4478_p5 }
  0x70   : > { %4488 = shalt.err (!%p4485_p11)
}
  0x71   : > { %s5559_s18 = smov 8   ;;  %s5560_s16 = smov 128  }
  0x72   : > { %s5561_s11 = sld [smem:[#allocation34_spill]]  ;;  %s4500_s0 = scalar_lea.vmem %s586_s21, 2048 }
  0x73   : > { %p4501_p12 = scmp.ne.s32.totalorder %s586_s21, %s4500_s0  ;;  %p4508_p2 = scmp.lt.s32.totalorder %s586_s21, %s586_s21 }
  0x74   : > { %p4509_p4 = scmp.lt.s32.totalorder %s4500_s0, %s4500_s0 }
  0x75   : > { %p4503_p0 = pnand %p4501_p12, %p4813_p7 }
  0x76   : > { %p4510_p8 = por %p4509_p4, %p4508_p2 }
  0x77   : > { %p4504_p13 = pneg %p4503_p0 }
  0x78   : > { %3938 = dma.hbm_to_vmem [thread:$0]  (!%p4803_p6), %s5561_s11, 4096, %s554_s23, [#allocation12], %s5560_s16, %s5560_s16, %s5559_s18  }
  0x79   : > { %p4511_p5 = pnand %p4510_p8, %p4504_p13 }
  0x7b   : > { %4514 = shalt.err (!%p4511_p5)
}
  0x7c   : > { %s5562_s15 = sld [smem:[#allocation36_spill]]  ;;  %s3499_s2 = sadd.s32 4294967294, %s4653_s30  }
  0x7d   : > { %s4909_s25 = sadd.s32 1, %s4653_s30   ;;  %s49_s23 = sadd.s32 1, %s4649_s29 }
  0x7e   : > { %s46_s3 = ssub.s32 %s4653_s30, %s4909_s25  ;;  %p56_p7 = scmp.ne.s32.totalorder %s4649_s29, %s4645_s28 }
  0x7f   : > { %p47_p4 = scmp.eq.s32.totalorder %s46_s3, 0  ;;  %p57_p9 = scmp.eq.s32.totalorder %s4653_s30, 0 }
  0x80   : > { %p62_p10 = scmp.ne.s32.totalorder %s4645_s28, %s4641_s27  ;;  %p422_p12 = scmp.eq.s32.totalorder %s4789_s1, 1 }
  0x81   : > { %s4920_s18 = scalar_select %p47_p4, %s4649_s29, %s49_s23  }
  0x82   : > { %3944 = dma.hbm_to_vmem [thread:$0]  (!%p4803_p6), %s5562_s15, 2048, %s586_s21, [#allocation15], %s5530_s17, %s5530_s17, %s5531_s19  }
  0x83   : > { %p4922_p11 = por %p57_p9, %p56_p7  ;;  %p4928_p6 = por %p5532_p1, %p62_p10 }
  0x84   : > { %p428_p0 = scmp.eq.s32.totalorder %s3499_s2, 1  ;;  %p3964_p13 = scmp.lt.s32.totalorder %s4653_s30, 2 }
  0x85   : > { %s5564_s21 = scalar_select %p4928_p6, 1, 0 }
  0x86   : > { %s602_s22 = sand.u32 1, %s4649_s29   ;;  %p4935_p2 = por %p422_p12, %p56_p7 }
  0x87   : > { %p4939_p8 = por %p428_p0, %p62_p10  ;;  %s3510_s24 = sshll.u32 %s602_s22, 6 }
  0x88   : > { %s5565_s26 = scalar_select %p4935_p2, 1, 0 }
  0x89   : > { %s5566_s0 = scalar_select %p4939_p8, 1, 0 }
  0x8a   : > { %s3735_s3 = sshll.u32 %s4653_s30, 10  ;;  %s5567_s19 = sld [smem:[#allocation27_spill]] }
  0x8b   : > { %s606_s2 = scalar_lea.vmem [#allocation2], %s3510_s24  ;;  %p4953_p5 = pnand %p3964_p13, %p4922_p11 }
  0x8c   : > { %s613_s7 = sshll.u32 %s606_s2, 4  ;;  %s4957_s11 = scalar_lea.sflag [#allocation3], %s602_s22  ;;  %s4949_s7 = int_to_ptr.vmem [resolvable:$true] %s613_s7 }
  0x8d   : > { %p4517_p7 = pneg %p4953_p5 }
  0x90   : > { %s4947_s5 = scalar_lea.hbm %s5567_s19, %s3735_s3  ;;  %s4520_s24 = scalar_lea.hbm %s5567_s19, 2048 }
  0x91   : > { %s4515_s13 = scalar_lea.hbm %s4947_s5, 1024  ;;  %p4521_p11 = scmp.lt.s32.totalorder %s4947_s5, %s5567_s19 }
  0x92   : > { %p4516_p4 = scmp.ne.s32.totalorder %s4947_s5, %s4515_s13  ;;  %p4522_p12 = scmp.lt.s32.totalorder %s4520_s24, %s4515_s13 }
  0x94   : > { %p4518_p9 = pnand %p4517_p7, %p4516_p4  ;;  %p4523_p0 = por %p4522_p12, %p4521_p11 }
  0x96   : > { %p4519_p10 = pneg %p4518_p9 }
  0x98   : > { %p4524_p13 = pnand %p4523_p0, %p4519_p10 }
  0x9a   : > { %4527 = shalt.err (!%p4524_p13)
}
  0x9b   : > { %s4528_s16 = scalar_lea.vmem %s4949_s7, 1024  ;;  %s4667_s22 = smov [#allocation2]  }
  0x9c   : > { %p4529_p1 = scmp.ne.s32.totalorder %s4949_s7, %s4528_s16  ;;  %s4533_s15 = sshll.u32 %s4667_s22, 4  ;;  %s4534_s15 = int_to_ptr.vmem [resolvable:$false] %s4533_s15 }
  0x9d   : > { %s4535_s17 = scalar_lea.vmem %s4534_s15, 2048  ;;  %p4536_p9 = scmp.lt.s32.totalorder %s4949_s7, %s4534_s15 }
  0x9e   : > { %p4531_p8 = pnand %p4529_p1, %p4517_p7  ;;  %p4537_p2 = scmp.lt.s32.totalorder %s4535_s17, %s4528_s16 }
  0xa0   : > { %p4532_p4 = pneg %p4531_p8  ;;  %p4538_p6 = por %p4537_p2, %p4536_p9 }
  0xa2   : > { %p4539_p3 = pnand %p4538_p6, %p4532_p4 }
  0xa4   : > { %4542 = shalt.err (!%p4539_p3)
}
  0xa5   : > { %s5569_s13 = smov 4   ;;  %s5570_s3 = smov 64  }
  0xa6   : > { %3948 = dma.hbm_to_vmem [thread:$0]  (!%p4953_p5), %s4947_s5, 1024, %s4949_s7, %s4957_s11, %s5570_s3, %s5570_s3, %s5569_s13  }
  0xa7   : > { %p5571_p1 = scmp.ne.s32.totalorder %s5550_s20, 0 }
  0xa8   : > { %s4984_s24 = sand.u32 (!%p5571_p1), 1, %s4645_s28   ;;  %p5572_p3 = scmp.ne.s32.totalorder (!%p5571_p1), %s5564_s21, 0 }
  0xa9   : > { %625 = sbr.rel (%p5571_p1) target bundleno = 1587 (0x633), region = 88  ;;  %s3514_s15 = sshll.u32 (!%p5571_p1), %s4984_s24, 6 }
  0xaa   : > { %s628_s23 = scalar_lea.sflag (!%p5571_p1), [#allocation3], %s4984_s24  ;;  %s4988_s2 = scalar_lea.vmem (!%p5571_p1), [#allocation2], %s3514_s15 }
  0xae   : > { %4612 = dma.done.wait (%p5572_p3), %s628_s23, 1024  }
  0xaf   : > { %4614 = vsyncadd (%p5572_p3), %s628_s23, 4294966272  ;;  %p5573_p6 = scmp.eq.s32.totalorder %s4789_s1, 0 }
  0xb1   : > { %4616 = dma.done.wait (%p5573_p6), [#allocation6], 6144   ;;  %p5574_p2 = pmov %p5573_p6 }
  0xb3   : > { %4618 = vsyncadd (%p5574_p2), [#allocation6], 4294961152  ;;  %p5575_p8 = pmov %p5574_p2 }
  0xb4   : > { %p5576_p5 = pmov %p5574_p2 }
  0xb5   : > { %4620 = dma.done.wait (%p5575_p8), [#allocation9], 6144  }
  0xb6   : > { %4622 = vsyncadd (%p5576_p5), [#allocation9], 4294961152  ;;  %p5577_p7 = pmov %p5574_p2 }
  0xb7   : > { %p5578_p10 = pmov %p5574_p2 }
  0xb8   : > { %4624 = dma.done.wait (%p5577_p7), [#allocation12], 6144  }
  0xb9   : > { %4626 = vsyncadd (%p5578_p10), [#allocation12], 4294961152  ;;  %p5579_p11 = pmov %p5574_p2 }
  0xba   : > { %p5580_p12 = pmov %p5574_p2 }
  0xbb   : > { %4628 = dma.done.wait (%p5579_p11), [#allocation15], 6144  }
  0xbc   : > { %4630 = vsyncadd (%p5580_p12), [#allocation15], 4294961152  ;;  %v4668_v0 = vmov 0   ;;  %v4021_v1 = vld [vmem:[#allocation5 + $0x74] ss:$8 sps:$4 sm:$0xff]   ;;  %v4045_v24 = vld [vmem:[%s4988_s2] sm:$0xff]  }
  0xbd   : > { %929 = vmatprep.mubr.bf16.mxu0 %v4668_v0  ;;  %v4023_v2 = vld [vmem:[#allocation5 + $0x70] ss:$8 sps:$4 sm:$0xff]   ;;  %897 = vmatprep.subr.bf16.mxu0 %v4021_v1  ;;  %v4024_v3 = vld [vmem:[#allocation5 + $0x64] ss:$8 sps:$4 sm:$0xff]   ;;  %v4026_v4 = vld [vmem:[#allocation5 + $0x60] ss:$8 sps:$4 sm:$0xff]  }
  0xbe   : > { %898 = vmatpush1.bf16.msra.mxu0 %v4023_v2  ;;  %v4027_v5 = vld [vmem:[#allocation5 + $0x54] ss:$8 sps:$4 sm:$0xff]   ;;  %v4029_v6 = vld [vmem:[#allocation5 + $0x50] ss:$8 sps:$4 sm:$0xff]   ;;  %v4030_v7 = vld [vmem:[#allocation5 + $0x44] ss:$8 sps:$4 sm:$0xff]  }
  0xbf   : > { %899 = vmatprep.subr.bf16.mxu0 %v4024_v3  ;;  %v4032_v8 = vld [vmem:[#allocation5 + $0x40] ss:$8 sps:$4 sm:$0xff]   ;;  %v4033_v9 = vld [vmem:[#allocation5 + $0x34] ss:$8 sps:$4 sm:$0xff]   ;;  %v4035_v10 = vld [vmem:[#allocation5 + $0x30] ss:$8 sps:$4 sm:$0xff]  }
  0xc0   : > { %v4036_v11 = vld [vmem:[#allocation5 + $0x24] ss:$8 sps:$4 sm:$0xff]   ;;  %v4038_v12 = vld [vmem:[#allocation5 + $0x20] ss:$8 sps:$4 sm:$0xff]   ;;  %v4039_v13 = vld [vmem:[#allocation5 + $0x14] ss:$8 sps:$4 sm:$0xff]  }
  0xc1   : > { %v4053_v14 = vld [vmem:[#allocation7 + $0x74] ss:$8 sps:$4 sm:$0xff]   ;;  %v4055_v15 = vld [vmem:[#allocation7 + $0x70] ss:$8 sps:$4 sm:$0xff]   ;;  %v4056_v16 = vld [vmem:[#allocation7 + $0x64] ss:$8 sps:$4 sm:$0xff]  }
  0xc2   : > { %900 = vmatpush1.bf16.msra.mxu0 %v4026_v4  ;;  %1262 = vmatprep.subr.bf16.mxu1 %v4053_v14  ;;  %v4058_v17 = vld [vmem:[#allocation7 + $0x60] ss:$8 sps:$4 sm:$0xff]   ;;  %v4041_v18 = vld [vmem:[#allocation5 + $0x10] ss:$8 sps:$4 sm:$0xff]   ;;  %v4059_v19 = vld [vmem:[#allocation7 + $0x54] ss:$8 sps:$4 sm:$0xff]  }
  0xc3   : > { %901 = vmatprep.subr.bf16.mxu0 %v4027_v5  ;;  %1263 = vmatpush1.bf16.msra.mxu1 %v4055_v15  ;;  %v4042_v20 = vld [vmem:[#allocation5 + $0x4] ss:$8 sps:$4 sm:$0xff]   ;;  %v4061_v21 = vld [vmem:[#allocation7 + $0x50] ss:$8 sps:$4 sm:$0xff]   ;;  %v4044_v22 = vld [vmem:[#allocation5] ss:$8 sps:$4 sm:$0xff]  }
  0xc4   : > { %1264 = vmatprep.subr.bf16.mxu1 %v4056_v16  ;;  %v4062_v23 = vld [vmem:[#allocation7 + $0x44] ss:$8 sps:$4 sm:$0xff]   ;;  %v4064_v25 = vld [vmem:[#allocation7 + $0x40] ss:$8 sps:$4 sm:$0xff]   ;;  %v4065_v26 = vld [vmem:[#allocation7 + $0x34] ss:$8 sps:$4 sm:$0xff]  }
  0xc5   : > { %v4067_v27 = vld [vmem:[#allocation7 + $0x30] ss:$8 sps:$4 sm:$0xff]   ;;  %v4068_v28 = vld [vmem:[#allocation7 + $0x24] ss:$8 sps:$4 sm:$0xff]   ;;  %v4070_v30 = vld [vmem:[#allocation7 + $0x20] ss:$8 sps:$4 sm:$0xff]  }
  0xc6   : > { %902 = vmatpush1.bf16.msra.mxu0 %v4029_v6  ;;  %v4046_v29 = vld [vmem:[%s4988_s2 + $0x8] sm:$0xff]   ;;  %v4071_v31 = vld [vmem:[#allocation7 + $0x14] ss:$8 sps:$4 sm:$0xff]   ;;  %v4073_v32 = vld [vmem:[#allocation7 + $0x10] ss:$8 sps:$4 sm:$0xff]   ;;  %s5581_s9 = sld [smem:[#allocation29_spill]] }
  0xc7   : > { %903 = vmatprep.subr.bf16.mxu0 %v4030_v7  ;;  %1265 = vmatpush1.bf16.msra.mxu1 %v4058_v17  ;;  %v4074_v33 = vld [vmem:[#allocation7 + $0x4] ss:$8 sps:$4 sm:$0xff]   ;;  %v4047_v34 = vld [vmem:[%s4988_s2 + $0x10] sm:$0xff]   ;;  %v4076_v35 = vld [vmem:[#allocation7] ss:$8 sps:$4 sm:$0xff]   ;;  %s3523_s13 = sshll.u32 %s4984_s24, 7 }
  0xc8   : > { %1266 = vmatprep.subr.bf16.mxu1 %v4059_v19  ;;  %v4077_v36 = vld [vmem:[#allocation7 + $0xf4] ss:$8 sps:$4 sm:$0xff]   ;;  %v4079_v37 = vld [vmem:[#allocation7 + $0xf0] ss:$8 sps:$4 sm:$0xff]   ;;  %v4080_v38 = vld [vmem:[#allocation7 + $0xe4] ss:$8 sps:$4 sm:$0xff]  }
  0xc9   : > { %v4048_v39 = vld [vmem:[%s4988_s2 + $0x18] sm:$0xff]   ;;  %v4082_v40 = vld [vmem:[#allocation7 + $0xe0] ss:$8 sps:$4 sm:$0xff]   ;;  %v4086_v43 = vld [vmem:[#allocation7 + $0xc4] ss:$8 sps:$4 sm:$0xff]   ;;  %s5225_s23 = scalar_lea.vmem [#allocation17], %s3523_s13 }
  0xca   : > { %904 = vmatpush1.bf16.msra.mxu0 %v4032_v8  ;;  %v4083_v41 = vld [vmem:[#allocation7 + $0xd4] ss:$8 sps:$4 sm:$0xff]   ;;  %v4085_v42 = vld [vmem:[#allocation7 + $0xd0] ss:$8 sps:$4 sm:$0xff]   ;;  %v4049_v44 = vld [vmem:[%s4988_s2 + $0x20] sm:$0xff]   ;;  %s5536_s11 = sshll.u32 %s4789_s1, 11 }
  0xcb   : > { %905 = vmatprep.subr.bf16.mxu0 %v4033_v9  ;;  %1267 = vmatpush1.bf16.msra.mxu1 %v4061_v21  ;;  %v4088_v45 = vld [vmem:[#allocation7 + $0xc0] ss:$8 sps:$4 sm:$0xff]   ;;  %v4089_v46 = vld [vmem:[#allocation7 + $0xb4] ss:$8 sps:$4 sm:$0xff]   ;;  %v4091_v47 = vld [vmem:[#allocation7 + $0xb0] ss:$8 sps:$4 sm:$0xff]  }
  0xcc   : > { %1268 = vmatprep.subr.bf16.mxu1 %v4062_v23  ;;  %v4050_v48 = vld [vmem:[%s4988_s2 + $0x28] sm:$0xff]   ;;  %v5024_v49 = vld [vmem:[%s4988_s2 + $0x30] sm:$0xff]   ;;  %v5029_v50 = vld [vmem:[%s4988_s2 + $0x38] sm:$0xff]   ;;  %s3302_s20 = sshll.u32 %s5225_s23, 4  ;;  %s5582_s22 = sld [smem:[#allocation38_spill]]  ;;  %s5385_s20 = int_to_ptr.vmem [resolvable:$true] %s3302_s20 }
  0xcd   : > { %v4092_v51 = vld [vmem:[#allocation7 + $0xa4] ss:$8 sps:$4 sm:$0xff]   ;;  %v4094_v52 = vld [vmem:[#allocation7 + $0xa0] ss:$8 sps:$4 sm:$0xff]   ;;  %v4095_v53 = vld [vmem:[#allocation7 + $0x94] ss:$8 sps:$4 sm:$0xff]  }
  0xce   : > { %906 = vmatpush1.bf16.msra.mxu0 %v4035_v10  ;;  %v4097_v54 = vld [vmem:[#allocation7 + $0x90] ss:$8 sps:$4 sm:$0xff]   ;;  %v4098_v55 = vld [vmem:[#allocation7 + $0x84] ss:$8 sps:$4 sm:$0xff]   ;;  %v4100_v56 = vld [vmem:[#allocation7 + $0x80] ss:$8 sps:$4 sm:$0xff]  }
  0xcf   : > { %907 = vmatprep.subr.bf16.mxu0 %v4036_v11  ;;  %1269 = vmatpush1.bf16.msra.mxu1 %v4064_v25  ;;  %v4101_v57 = vld [vmem:[#allocation8 + $0x70] ss:$8 sps:$4 sm:$0xff]   ;;  %v4103_v58 = vld [vmem:[#allocation8 + $0x74] ss:$8 sps:$4 sm:$0xff]   ;;  %v4106_v59 = vld [vmem:[#allocation8 + $0x64] ss:$8 sps:$4 sm:$0xff]  }
  0xd0   : > { %1270 = vmatprep.subr.bf16.mxu1 %v4065_v26  ;;  %v4104_v60 = vld [vmem:[#allocation8 + $0x60] ss:$8 sps:$4 sm:$0xff]   ;;  %v4109_v61 = vld [vmem:[#allocation8 + $0x54] ss:$8 sps:$4 sm:$0xff]   ;;  %v4107_v62 = vld [vmem:[#allocation8 + $0x50] ss:$8 sps:$4 sm:$0xff]  }
  0xd1   : > { %v4112_v63 = vld [vmem:[#allocation8 + $0x44] ss:$8 sps:$4 sm:$0xff]   ;;  %v4110_v1 = vld [vmem:[#allocation8 + $0x40] ss:$8 sps:$4 sm:$0xff]   ;;  %v4115_v2 = vld [vmem:[#allocation8 + $0x34] ss:$8 sps:$4 sm:$0xff]  }
  0xd2   : > { %908 = vmatpush1.bf16.msra.mxu0 %v4038_v12  ;;  %v4113_v3 = vld [vmem:[#allocation8 + $0x30] ss:$8 sps:$4 sm:$0xff]   ;;  %v4118_v4 = vld [vmem:[#allocation8 + $0x24] ss:$8 sps:$4 sm:$0xff]   ;;  %v4116_v5 = vld [vmem:[#allocation8 + $0x20] ss:$8 sps:$4 sm:$0xff]   ;;  %s5383_s17 = scalar_lea.hbm %s5582_s22, %s5536_s11 }
  0xd3   : > { %909 = vmatprep.subr.bf16.mxu0 %v4039_v13  ;;  %1271 = vmatpush1.bf16.msra.mxu1 %v4067_v27  ;;  %v4121_v6 = vld [vmem:[#allocation8 + $0x14] ss:$8 sps:$4 sm:$0xff]   ;;  %v4119_v7 = vld [vmem:[#allocation8 + $0x10] ss:$8 sps:$4 sm:$0xff]   ;;  %v4124_v8 = vld [vmem:[#allocation8 + $0x4] ss:$8 sps:$4 sm:$0xff]  }
  0xd4   : > { %1272 = vmatprep.subr.bf16.mxu1 %v4068_v28  ;;  %v4122_v9 = vld [vmem:[#allocation8] ss:$8 sps:$4 sm:$0xff]   ;;  %v4127_v10 = vld [vmem:[#allocation8 + $0xf4] ss:$8 sps:$4 sm:$0xff]   ;;  %v4125_v11 = vld [vmem:[#allocation8 + $0xf0] ss:$8 sps:$4 sm:$0xff]  }
  0xd5   : > { %v4130_v12 = vld [vmem:[#allocation8 + $0xe4] ss:$8 sps:$4 sm:$0xff]   ;;  %v4128_v13 = vld [vmem:[#allocation8 + $0xe0] ss:$8 sps:$4 sm:$0xff]   ;;  %v4133_v14 = vld [vmem:[#allocation8 + $0xd4] ss:$8 sps:$4 sm:$0xff]  }
  0xd6   : > { %910 = vmatpush1.bf16.msra.mxu0 %v4041_v18  ;;  %v4131_v15 = vld [vmem:[#allocation8 + $0xd0] ss:$8 sps:$4 sm:$0xff]   ;;  %v4136_v16 = vld [vmem:[#allocation8 + $0xc4] ss:$8 sps:$4 sm:$0xff]   ;;  %v4134_v17 = vld [vmem:[#allocation8 + $0xc0] ss:$8 sps:$4 sm:$0xff]  }
  0xd7   : > { %911 = vmatprep.subr.bf16.mxu0 %v4042_v20  ;;  %1273 = vmatpush1.bf16.msra.mxu1 %v4070_v30  ;;  %v4139_v18 = vld [vmem:[#allocation8 + $0xb4] ss:$8 sps:$4 sm:$0xff]   ;;  %v4137_v19 = vld [vmem:[#allocation8 + $0xb0] ss:$8 sps:$4 sm:$0xff]   ;;  %v759_v20 = vlaneseq  ;;  %s3284_s3 = scalar_lea.sflag [#allocation4], %s4984_s24  ;;  %s4543_s15 = scalar_lea.vmem %s5385_s20, 2048 }
  0xd8   : > { %1274 = vmatprep.subr.bf16.mxu1 %v4071_v31  ;;  %p4544_p0 = scmp.ne.s32.totalorder %s5385_s20, %s4543_s15  ;;  %p5583_p13 = scmp.ne.s32.totalorder %s5565_s26, 0 }
  0xd9   : > { %v760_v21 = vshrl.u32 %v759_v20, 7 }
  0xda   : > { %912 = vmatpush1.bf16.msra.mxu0 %v4044_v22  ;;  %p4545_p4 = pnand %p4544_p0, %p5583_p13 }
  0xdb   : > { %1275 = vmatpush1.bf16.msra.mxu1 %v4073_v32  ;;  %1627 = vmatprep.subr.bf16.mxu0 %v4103_v58  ;;  %v5032_v22 = vsub.s32 1, %v760_v21  ;;  %v5034_v23 = vsub.s32 0, %v760_v21 }
  0xdc   : > { %1276 = vmatprep.subr.bf16.mxu1 %v4074_v33  ;;  %p4546_p9 = pneg %p4545_p4 }
  0xdd   : > { %930 = vmatmul.mubr.bf16.vlgmr.msra.gmra.mxu0 %v4045_v24  ;;  %v757_v24 = vld [vmem:[%s5581_s9] sm:$0x3] }
  0xde   : > { %939 = vmatprep.mubr.bf16.mxu0 %v4668_v0  ;;  %1628 = vmatpush1.bf16.msra.mxu0 %v4101_v57  ;;  %v5040_v26 = vrot.slane %v757_v24, %v5032_v22  ;;  %v5043_v27 = vrot.slane %v757_v24, %v5034_v23 }
  0xdf   : > { %1277 = vmatpush1.bf16.msra.mxu1 %v4076_v35  ;;  %1629 = vmatprep.subr.bf16.mxu0 %v4106_v59 }
  0xe0   : > { %1278 = vmatprep.subr.bf16.mxu1 %v4077_v36 }
  0xe2   : > { %1630 = vmatpush1.bf16.msra.mxu0 %v4104_v60 }
  0xe3   : > { %1279 = vmatpush2.bf16.msra.mxu1 %v4079_v37  ;;  %1631 = vmatprep.subr.bf16.mxu0 %v4109_v61 }
  0xe4   : > { %1280 = vmatprep.subr.bf16.mxu1 %v4080_v38 }
  0xe5   : > { %940 = vmatmul.mubr.bf16.gmra.mxu0 %v4046_v29 }
  0xe6   : > { %949 = vmatprep.mubr.bf16.mxu0 %v4668_v0  ;;  %1632 = vmatpush1.bf16.msra.mxu0 %v4107_v62 }
  0xe7   : > { %1281 = vmatpush2.bf16.msra.mxu1 %v4082_v40  ;;  %1633 = vmatprep.subr.bf16.mxu0 %v4112_v63 }
  0xe8   : > { %1282 = vmatprep.subr.bf16.mxu1 %v4083_v41 }
  0xea   : > { %1634 = vmatpush1.bf16.msra.mxu0 %v4110_v1 }
  0xeb   : > { %1283 = vmatpush2.bf16.msra.mxu1 %v4085_v42  ;;  %1635 = vmatprep.subr.bf16.mxu0 %v4115_v2 }
  0xec   : > { %1284 = vmatprep.subr.bf16.mxu1 %v4086_v43 }
  0xed   : > { %950 = vmatmul.mubr.bf16.gmra.mxu0 %v4047_v34 }
  0xee   : > { %959 = vmatprep.mubr.bf16.mxu0 %v4668_v0  ;;  %1636 = vmatpush1.bf16.msra.mxu0 %v4113_v3 }
  0xef   : > { %1285 = vmatpush2.bf16.msra.mxu1 %v4088_v45  ;;  %1637 = vmatprep.subr.bf16.mxu0 %v4118_v4 }
  0xf0   : > { %1286 = vmatprep.subr.bf16.mxu1 %v4089_v46 }
  0xf2   : > { %1638 = vmatpush1.bf16.msra.mxu0 %v4116_v5 }
  0xf3   : > { %1287 = vmatpush2.bf16.msra.mxu1 %v4091_v47  ;;  %1639 = vmatprep.subr.bf16.mxu0 %v4121_v6 }
  0xf4   : > { %1288 = vmatprep.subr.bf16.mxu1 %v4092_v51 }
  0xf5   : > { %960 = vmatmul.mubr.bf16.gmra.mxu0 %v4048_v39 }
  0xf6   : > { %969 = vmatprep.mubr.bf16.mxu0 %v4668_v0  ;;  %1640 = vmatpush1.bf16.msra.mxu0 %v4119_v7 }
  0xf7   : > { %1289 = vmatpush2.bf16.msra.mxu1 %v4094_v52  ;;  %1641 = vmatprep.subr.bf16.mxu0 %v4124_v8 }
  0xf8   : > { %1290 = vmatprep.subr.bf16.mxu1 %v4095_v53 }
  0xfa   : > { %1642 = vmatpush1.bf16.msra.mxu0 %v4122_v9 }
  0xfb   : > { %1291 = vmatpush2.bf16.msra.mxu1 %v4097_v54  ;;  %1643 = vmatprep.subr.bf16.mxu0 %v4127_v10 }
  0xfc   : > { %1292 = vmatprep.subr.bf16.mxu1 %v4098_v55 }
  0xfd   : > { %970 = vmatmul.mubr.bf16.gmra.mxu0 %v4049_v44 }
  0xfe   : > { %979 = vmatprep.mubr.bf16.mxu0 %v4668_v0  ;;  %1644 = vmatpush2.bf16.msra.mxu0 %v4125_v11 }
  0xff   : > { %1293 = vmatpush2.bf16.msra.mxu1 %v4100_v56  ;;  %1645 = vmatprep.subr.bf16.mxu0 %v4130_v12 }
 0x102   : > { %1646 = vmatpush2.bf16.msra.mxu0 %v4128_v13 }
 0x103   : > { %1647 = vmatprep.subr.bf16.mxu0 %v4133_v14 }
 0x105   : > { %980 = vmatmul.mubr.bf16.gmra.mxu0 %v4050_v48 }
 0x106   : > { %989 = vmatprep.mubr.bf16.mxu0 %v4668_v0  ;;  %1648 = vmatpush2.bf16.msra.mxu0 %v4131_v15 }
 0x107   : > { %1649 = vmatprep.subr.bf16.mxu0 %v4136_v16 }
 0x10a   : > { %1650 = vmatpush2.bf16.msra.mxu0 %v4134_v17 }
 0x10b   : > { %1651 = vmatprep.subr.bf16.mxu0 %v4139_v18 }
 0x10d   : > { %990 = vmatmul.mubr.bf16.gmra.mxu0 %v5024_v49 }
 0x10e   : > { %999 = vmatprep.mubr.bf16.mxu0 %v4668_v0  ;;  %1652 = vmatpush2.bf16.msra.mxu0 %v4137_v19 }
 0x115   : > { %1000 = vmatmul.mubr.bf16.gmra.mxu0 %v5029_v50 }
 0x19d   : > { %v931_v25 = vpop.f32.mrf.mxu0 }
 0x19e   : > { %v932_v32 = vadd.f32 %v931_v25, %v5043_v27 }
 0x19f   : > { %v933_v28 = vpop.f32.mrf.mxu0 }
 0x1a0   : > { %v934_v30 = vadd.f32 %v933_v28, %v5040_v26  ;;  %v1010_v39 = vmax.f32 %v932_v32, 0.0 }
 0x1a1   : > { %v935_v29 = vpop.f32.mrf.mxu0 }
 0x1a2   : > { %v936_v31 = vadd.f32 %v935_v29, %v5043_v27  ;;  %v1011_v37 = vmax.f32 %v934_v30, 0.0 }
 0x1a3   : > { %v937_v33 = vpop.f32.mrf.mxu0 }
 0x1a4   : > { %v938_v34 = vadd.f32 %v937_v33, %v5040_v26  ;;  %v1012_v35 = vmax.f32 %v936_v31, 0.0 }
 0x1a5   : > { %v941_v36 = vpop.f32.mrf.mxu0 }
 0x1a6   : > { %v1013_v38 = vmax.f32 %v938_v34, 0.0  ;;  %v1042_v42 = vpack.c.bf16 %v1012_v35, %v1010_v39  ;;  %v942_v46 = vadd.f32 %v941_v36, %v5043_v27 }
 0x1a7   : > { %v943_v40 = vpop.f32.mrf.mxu0 }
 0x1a8   : > { %v1043_v41 = vpack.c.bf16 %v1013_v38, %v1011_v37  ;;  %v944_v44 = vadd.f32 %v943_v40, %v5040_v26  ;;  %v1014_v55 = vmax.f32 %v942_v46, 0.0 }
 0x1a9   : > { %v945_v43 = vpop.f32.mrf.mxu0 }
 0x1aa   : > { %v946_v45 = vadd.f32 %v945_v43, %v5043_v27  ;;  %1294 = vmatprep.mubr.bf16.mxu1 %v1043_v41  ;;  %v1015_v53 = vmax.f32 %v944_v44, 0.0 }
 0x1ab   : > { %v947_v47 = vpop.f32.mrf.mxu0  ;;  %1295 = vmatmul.mubr.bf16.vlgmr.msra.gmra.mxu1 %v1042_v42 }
 0x1ac   : > { %v948_v48 = vadd.f32 %v947_v47, %v5040_v26  ;;  %v1016_v51 = vmax.f32 %v946_v45, 0.0 }
 0x1ad   : > { %v951_v52 = vpop.f32.mrf.mxu0 }
 0x1ae   : > { %v1017_v54 = vmax.f32 %v948_v48, 0.0  ;;  %v1044_v58 = vpack.c.bf16 %v1016_v51, %v1014_v55  ;;  %v952_v62 = vadd.f32 %v951_v52, %v5043_v27 }
 0x1af   : > { %v953_v56 = vpop.f32.mrf.mxu0 }
 0x1b0   : > { %v1045_v57 = vpack.c.bf16 %v1017_v54, %v1015_v53  ;;  %v954_v60 = vadd.f32 %v953_v56, %v5040_v26  ;;  %v1018_v6 = vmax.f32 %v952_v62, 0.0 }
 0x1b1   : > { %v955_v59 = vpop.f32.mrf.mxu0 }
 0x1b2   : > { %v956_v61 = vadd.f32 %v955_v59, %v5043_v27  ;;  %1304 = vmatprep.mubr.bf16.mxu1 %v1045_v57  ;;  %v1019_v4 = vmax.f32 %v954_v60, 0.0 }
 0x1b3   : > { %v957_v63 = vpop.f32.mrf.mxu0  ;;  %1305 = vmatmul.mubr.bf16.gmra.mxu1 %v1044_v58 }
 0x1b4   : > { %v958_v1 = vadd.f32 %v957_v63, %v5040_v26  ;;  %v1020_v2 = vmax.f32 %v956_v61, 0.0 }
 0x1b5   : > { %v961_v3 = vpop.f32.mrf.mxu0 }
 0x1b6   : > { %v1021_v5 = vmax.f32 %v958_v1, 0.0  ;;  %v1046_v9 = vpack.c.bf16 %v1020_v2, %v1018_v6  ;;  %v962_v13 = vadd.f32 %v961_v3, %v5043_v27 }
 0x1b7   : > { %v963_v7 = vpop.f32.mrf.mxu0 }
 0x1b8   : > { %v1047_v8 = vpack.c.bf16 %v1021_v5, %v1019_v4  ;;  %v964_v11 = vadd.f32 %v963_v7, %v5040_v26  ;;  %v1022_v20 = vmax.f32 %v962_v13, 0.0 }
 0x1b9   : > { %v965_v10 = vpop.f32.mrf.mxu0 }
 0x1ba   : > { %v966_v12 = vadd.f32 %v965_v10, %v5043_v27  ;;  %1314 = vmatprep.mubr.bf16.mxu1 %v1047_v8  ;;  %v1023_v18 = vmax.f32 %v964_v11, 0.0 }
 0x1bb   : > { %v967_v14 = vpop.f32.mrf.mxu0  ;;  %1315 = vmatmul.mubr.bf16.gmra.mxu1 %v1046_v9 }
 0x1bc   : > { %v968_v15 = vadd.f32 %v967_v14, %v5040_v26  ;;  %v1024_v16 = vmax.f32 %v966_v12, 0.0 }
 0x1bd   : > { %v971_v17 = vpop.f32.mrf.mxu0 }
 0x1be   : > { %v1025_v19 = vmax.f32 %v968_v15, 0.0  ;;  %v1048_v25 = vpack.c.bf16 %v1024_v16, %v1022_v20  ;;  %v972_v31 = vadd.f32 %v971_v17, %v5043_v27 }
 0x1bf   : > { %v973_v21 = vpop.f32.mrf.mxu0 }
 0x1c0   : > { %v1049_v24 = vpack.c.bf16 %v1025_v19, %v1023_v18  ;;  %v974_v29 = vadd.f32 %v973_v21, %v5040_v26  ;;  %v1026_v38 = vmax.f32 %v972_v31, 0.0  ;;  %v4142_v21 = vld [vmem:[#allocation8 + $0xa4] ss:$8 sps:$4 sm:$0xff]  }
 0x1c1   : > { %v975_v28 = vpop.f32.mrf.mxu0  ;;  %1653 = vmatprep.subr.bf16.mxu0 %v4142_v21 }
 0x1c2   : > { %v976_v30 = vadd.f32 %v975_v28, %v5043_v27  ;;  %1324 = vmatprep.mubr.bf16.mxu1 %v1049_v24  ;;  %v1027_v36 = vmax.f32 %v974_v29, 0.0  ;;  %v4140_v24 = vld [vmem:[#allocation8 + $0xa0] ss:$8 sps:$4 sm:$0xff]   ;;  %v4143_v28 = vld [vmem:[#allocation8 + $0x90] ss:$8 sps:$4 sm:$0xff]  }
 0x1c3   : > { %v977_v32 = vpop.f32.mrf.mxu0  ;;  %1325 = vmatmul.mubr.bf16.gmra.mxu1 %v1048_v25  ;;  %1654 = vmatpush2.bf16.msra.mxu0 %v4140_v24  ;;  %v4145_v25 = vld [vmem:[#allocation8 + $0x94] ss:$8 sps:$4 sm:$0xff]   ;;  %v4146_v29 = vld [vmem:[#allocation8 + $0x80] ss:$8 sps:$4 sm:$0xff]  }
 0x1c4   : > { %v978_v33 = vadd.f32 %v977_v32, %v5040_v26  ;;  %v1028_v34 = vmax.f32 %v976_v30, 0.0  ;;  %1655 = vmatprep.subr.bf16.mxu0 %v4145_v25  ;;  %v1090_v30 = vld [vmem:[%s5510_s4] sm:$0x3]  ;;  %v4183_v25 = vld [vmem:[#allocation10 + $0x50] sm:$0xff]  }
 0x1c5   : > { %v981_v35 = vpop.f32.mrf.mxu0  ;;  %v5081_v32 = vrot.slane %v1090_v30, %v5032_v22 }
 0x1c6   : > { %v1029_v37 = vmax.f32 %v978_v33, 0.0  ;;  %v1050_v41 = vpack.c.bf16 %v1028_v34, %v1026_v38  ;;  %v982_v45 = vadd.f32 %v981_v35, %v5043_v27  ;;  %v5084_v33 = vrot.slane %v1090_v30, %v5034_v23  ;;  %v4163_v30 = vld [vmem:[#allocation11 + $0x34] ss:$8 sps:$4 sm:$0xff]  }
 0x1c7   : > { %v983_v39 = vpop.f32.mrf.mxu0  ;;  %1656 = vmatpush2.bf16.msra.mxu0 %v4143_v28 }
 0x1c8   : > { %v1051_v40 = vpack.c.bf16 %v1029_v37, %v1027_v36  ;;  %v984_v43 = vadd.f32 %v983_v39, %v5040_v26  ;;  %v1030_v54 = vmax.f32 %v982_v45, 0.0 }
 0x1c9   : > { %v985_v42 = vpop.f32.mrf.mxu0 }
 0x1ca   : > { %v986_v44 = vadd.f32 %v985_v42, %v5043_v27  ;;  %1334 = vmatprep.mubr.bf16.mxu1 %v1051_v40  ;;  %v1031_v52 = vmax.f32 %v984_v43, 0.0  ;;  %v4173_v40 = vld [vmem:[#allocation10 + $0x78] sm:$0xff]   ;;  %v4175_v42 = vld [vmem:[#allocation10 + $0x70] sm:$0xff]  }
 0x1cb   : > { %v987_v46 = vpop.f32.mrf.mxu0  ;;  %1335 = vmatmul.mubr.bf16.gmra.mxu1 %v1050_v41  ;;  %v4174_v41 = vld [vmem:[#allocation10 + $0x38] sm:$0xff]   ;;  %3738 = vmatprep.subr.bf16.mxu1 %v4173_v40 }
 0x1cc   : > { %v988_v47 = vadd.f32 %v987_v46, %v5040_v26  ;;  %v1032_v48 = vmax.f32 %v986_v44, 0.0  ;;  %3739 = vmatpush3.bf16.msra.mxu1 %v4174_v41  ;;  %v4161_v40 = vld [vmem:[#allocation11 + $0x30] ss:$8 sps:$4 sm:$0xff]  }
 0x1cd   : > { %v991_v51 = vpop.f32.mrf.mxu0  ;;  %3740 = vmatprep.subr.bf16.mxu1 %v4175_v42 }
 0x1ce   : > { %v1033_v53 = vmax.f32 %v988_v47, 0.0  ;;  %v1052_v57 = vpack.c.bf16 %v1032_v48, %v1030_v54  ;;  %v992_v61 = vadd.f32 %v991_v51, %v5043_v27  ;;  %v4176_v48 = vld [vmem:[#allocation10 + $0x30] sm:$0xff]  }
 0x1cf   : > { %v993_v55 = vpop.f32.mrf.mxu0 }
 0x1d0   : > { %v1053_v56 = vpack.c.bf16 %v1033_v53, %v1031_v52  ;;  %v994_v59 = vadd.f32 %v993_v55, %v5040_v26  ;;  %v1034_v5 = vmax.f32 %v992_v61, 0.0  ;;  %v4177_v53 = vld [vmem:[#allocation10 + $0x68] sm:$0xff]   ;;  %v4149_v55 = vld [vmem:[#allocation11 + $0x70] ss:$8 sps:$4 sm:$0xff]   ;;  %3741 = vmatpush3.bf16.msra.mxu1 %v4176_v48 }
 0x1d1   : > { %v995_v58 = vpop.f32.mrf.mxu0  ;;  %v4178_v61 = vld [vmem:[#allocation10 + $0x28] sm:$0xff]   ;;  %3742 = vmatprep.subr.bf16.mxu1 %v4177_v53 }
 0x1d2   : > { %v996_v60 = vadd.f32 %v995_v58, %v5043_v27  ;;  %1344 = vmatprep.mubr.bf16.mxu1 %v1053_v56  ;;  %v1035_v3 = vmax.f32 %v994_v59, 0.0  ;;  %v4154_v58 = vld [vmem:[#allocation11 + $0x64] ss:$8 sps:$4 sm:$0xff]  }
 0x1d3   : > { %v997_v62 = vpop.f32.mrf.mxu0  ;;  %1345 = vmatmul.mubr.bf16.gmra.mxu1 %v1052_v57 }
 0x1d4   : > { %v998_v63 = vadd.f32 %v997_v62, %v5040_v26  ;;  %v1036_v1 = vmax.f32 %v996_v60, 0.0  ;;  %3743 = vmatpush3.bf16.msra.mxu1 %v4178_v61  ;;  %v4167_v61 = vld [vmem:[#allocation11 + $0x10] ss:$8 sps:$4 sm:$0xff]  }
 0x1d5   : > { %v1001_v2 = vpop.f32.mrf.mxu0 }
 0x1d6   : > { %v1037_v4 = vmax.f32 %v998_v63, 0.0  ;;  %v1054_v8 = vpack.c.bf16 %v1036_v1, %v1034_v5  ;;  %v1002_v12 = vadd.f32 %v1001_v2, %v5043_v27  ;;  %v4179_v1 = vld [vmem:[#allocation10 + $0x60] sm:$0xff]  }
 0x1d7   : > { %v1003_v6 = vpop.f32.mrf.mxu0  ;;  %3744 = vmatprep.subr.bf16.mxu1 %v4179_v1  ;;  %v4172_v1 = vld [vmem:[#allocation11 + $0x4] ss:$8 sps:$4 sm:$0xff]  }
 0x1d8   : > { %v1055_v7 = vpack.c.bf16 %v1037_v4, %v1035_v3  ;;  %v1004_v10 = vadd.f32 %v1003_v6, %v5040_v26  ;;  %v1038_v18 = vmax.f32 %v1002_v12, 0.0  ;;  %v4152_v3 = vld [vmem:[#allocation11 + $0x60] ss:$8 sps:$4 sm:$0xff]   ;;  %v4157_v6 = vld [vmem:[#allocation11 + $0x54] ss:$8 sps:$4 sm:$0xff]  }
 0x1d9   : > { %v1005_v9 = vpop.f32.mrf.mxu0  ;;  %v4181_v12 = vld [vmem:[#allocation10 + $0x58] sm:$0xff]  }
 0x1da   : > { %v1006_v11 = vadd.f32 %v1005_v9, %v5043_v27  ;;  %1354 = vmatprep.mubr.bf16.mxu1 %v1055_v7  ;;  %v1039_v16 = vmax.f32 %v1004_v10, 0.0  ;;  %v4148_v27 = vld [vmem:[#allocation8 + $0x84] ss:$8 sps:$4 sm:$0xff]  }
 0x1db   : > { %v1007_v13 = vpop.f32.mrf.mxu0  ;;  %1355 = vmatmul.mubr.bf16.gmra.mxu1 %v1054_v8  ;;  %1657 = vmatprep.subr.bf16.mxu0 %v4148_v27  ;;  %v4180_v9 = vld [vmem:[#allocation10 + $0x20] sm:$0xff]  }
 0x1dc   : > { %v1008_v14 = vadd.f32 %v1007_v13, %v5040_v26  ;;  %v1040_v15 = vmax.f32 %v1006_v11, 0.0  ;;  %1658 = vmatpush2.bf16.msra.mxu0 %v4146_v29  ;;  %v4151_v26 = vld [vmem:[#allocation11 + $0x74] ss:$8 sps:$4 sm:$0xff]   ;;  %3745 = vmatpush3.bf16.msra.mxu1 %v4180_v9  ;;  %v4158_v27 = vld [vmem:[#allocation11 + $0x40] ss:$8 sps:$4 sm:$0xff]  }
 0x1dd   : > { %2144 = vmatprep.subr.bf16.mxu0 %v4151_v26  ;;  %3746 = vmatprep.subr.bf16.mxu1 %v4181_v12 }
 0x1de   : > { %v1041_v17 = vmax.f32 %v1008_v14, 0.0  ;;  %v1056_v20 = vpack.c.bf16 %v1040_v15, %v1038_v18  ;;  %v4155_v14 = vld [vmem:[#allocation11 + $0x50] ss:$8 sps:$4 sm:$0xff]  }
 0x1e0   : > { %v1057_v19 = vpack.c.bf16 %v1041_v17, %v1039_v16  ;;  %v4160_v17 = vld [vmem:[#allocation11 + $0x44] ss:$8 sps:$4 sm:$0xff]  }
 0x1e2   : > { %1364 = vmatprep.mubr.bf16.mxu1 %v1057_v19 }
 0x1e3   : > { %1365 = vmatmul.mubr.bf16.gmra.mxu1 %v1056_v20  ;;  %v4182_v20 = vld [vmem:[#allocation10 + $0x18] sm:$0xff]  }
 0x1e4   : > { %3747 = vmatpush3.bf16.msra.mxu1 %v4182_v20 }
 0x1e5   : > { %3748 = vmatprep.subr.bf16.mxu1 %v4183_v25 }
 0x26b   : > { %v1296_v31 = vpop.f32.mrf.mxu1 }
 0x26c   : > { %v1297_v38 = vadd.f32 %v1296_v31, %v5084_v33 }
 0x26d   : > { %v1298_v34 = vpop.f32.mrf.mxu1 }
 0x26e   : > { %v1299_v36 = vadd.f32 %v1298_v34, %v5081_v32  ;;  %v1375_v51 = vmax.f32 %v1297_v38, 0.0  ;;  %v4185_v38 = vld [vmem:[#allocation10 + $0x48] sm:$0xff]  }
 0x26f   : > { %v1300_v35 = vpop.f32.mrf.mxu1 }
 0x270   : > { %v1301_v37 = vadd.f32 %v1300_v35, %v5084_v33  ;;  %v1376_v46 = vmax.f32 %v1299_v36, 0.0  ;;  %v4184_v35 = vld [vmem:[#allocation10 + $0x10] sm:$0xff]  }
 0x271   : > { %v1302_v39 = vpop.f32.mrf.mxu1  ;;  %3749 = vmatpush3.bf16.msra.mxu1 %v4184_v35 }
 0x272   : > { %v1303_v43 = vadd.f32 %v1302_v39, %v5081_v32  ;;  %v1377_v44 = vmax.f32 %v1301_v37, 0.0  ;;  %3750 = vmatprep.subr.bf16.mxu1 %v4185_v38 }
 0x273   : > { %v1306_v45 = vpop.f32.mrf.mxu1 }
 0x274   : > { %v1378_v47 = vmax.f32 %v1303_v43, 0.0  ;;  %v1407_v56 = vpack.c.bf16 %v1377_v44, %v1375_v51  ;;  %v1307_v62 = vadd.f32 %v1306_v45, %v5084_v33  ;;  %v4166_v43 = vld [vmem:[#allocation11 + $0x24] ss:$8 sps:$4 sm:$0xff]  }
 0x275   : > { %v1308_v52 = vpop.f32.mrf.mxu1 }
 0x276   : > { %v1408_v54 = vpack.c.bf16 %v1378_v47, %v1376_v46  ;;  %v1309_v59 = vadd.f32 %v1308_v52, %v5081_v32  ;;  %v1379_v10 = vmax.f32 %v1307_v62, 0.0  ;;  %v4186_v46 = vld [vmem:[#allocation10 + $0x8] sm:$0xff]  }
 0x277   : > { %v1310_v57 = vpop.f32.mrf.mxu1  ;;  %v4164_v52 = vld [vmem:[#allocation11 + $0x20] ss:$8 sps:$4 sm:$0xff]   ;;  %3751 = vmatpush3.bf16.msra.mxu1 %v4186_v46 }
 0x278   : > { %v1311_v60 = vadd.f32 %v1310_v57, %v5084_v33  ;;  %1659 = vmatprep.mubr.bf16.mxu0 %v1408_v54  ;;  %v1380_v7 = vmax.f32 %v1309_v59, 0.0 }
 0x279   : > { %v1312_v63 = vpop.f32.mrf.mxu1  ;;  %1660 = vmatmul.mubr.bf16.vlgmr.msra.gmra.mxu0 %v1407_v56 }
 0x27a   : > { %v1313_v2 = vadd.f32 %v1312_v63, %v5081_v32  ;;  %2145 = vmatpush1.bf16.msra.mxu0 %v4149_v55  ;;  %v1381_v4 = vmax.f32 %v1311_v60, 0.0  ;;  %v4169_v55 = vld [vmem:[#allocation11 + $0x14] ss:$8 sps:$4 sm:$0xff]  }
 0x27b   : > { %v1316_v5 = vpop.f32.mrf.mxu1  ;;  %2146 = vmatprep.subr.bf16.mxu0 %v4154_v58 }
 0x27c   : > { %v1382_v8 = vmax.f32 %v1313_v2, 0.0  ;;  %v1409_v15 = vpack.c.bf16 %v1381_v4, %v1379_v10  ;;  %v1317_v21 = vadd.f32 %v1316_v5, %v5084_v33 }
 0x27d   : > { %v1318_v11 = vpop.f32.mrf.mxu1 }
 0x27e   : > { %v1410_v13 = vpack.c.bf16 %v1382_v8, %v1380_v7  ;;  %2147 = vmatpush1.bf16.msra.mxu0 %v4152_v3  ;;  %v1319_v18 = vadd.f32 %v1318_v11, %v5081_v32  ;;  %v1383_v36 = vmax.f32 %v1317_v21, 0.0  ;;  %v4170_v7 = vld [vmem:[#allocation11] ss:$8 sps:$4 sm:$0xff]  }
 0x27f   : > { %v1320_v16 = vpop.f32.mrf.mxu1  ;;  %2148 = vmatprep.subr.bf16.mxu0 %v4157_v6 }
 0x280   : > { %v1321_v19 = vadd.f32 %v1320_v16, %v5084_v33  ;;  %1669 = vmatprep.mubr.bf16.mxu0 %v1410_v13  ;;  %v1384_v31 = vmax.f32 %v1319_v18, 0.0 }
 0x281   : > { %v1322_v24 = vpop.f32.mrf.mxu1  ;;  %1670 = vmatmul.mubr.bf16.gmra.mxu0 %v1409_v15 }
 0x282   : > { %v1323_v28 = vadd.f32 %v1322_v24, %v5081_v32  ;;  %2149 = vmatpush1.bf16.msra.mxu0 %v4155_v14  ;;  %v1385_v29 = vmax.f32 %v1321_v19, 0.0 }
 0x283   : > { %v1326_v26 = vpop.f32.mrf.mxu1  ;;  %2150 = vmatprep.subr.bf16.mxu0 %v4160_v17 }
 0x284   : > { %v1386_v34 = vmax.f32 %v1323_v28, 0.0  ;;  %v1411_v41 = vpack.c.bf16 %v1385_v29, %v1383_v36  ;;  %v1327_v47 = vadd.f32 %v1326_v26, %v5084_v33 }
 0x285   : > { %v1328_v37 = vpop.f32.mrf.mxu1 }
 0x286   : > { %v1412_v39 = vpack.c.bf16 %v1386_v34, %v1384_v31  ;;  %2151 = vmatpush1.bf16.msra.mxu0 %v4158_v27  ;;  %v1329_v44 = vadd.f32 %v1328_v37, %v5081_v32  ;;  %v1387_v58 = vmax.f32 %v1327_v47, 0.0 }
 0x287   : > { %v1330_v42 = vpop.f32.mrf.mxu1  ;;  %2152 = vmatprep.subr.bf16.mxu0 %v4163_v30 }
 0x288   : > { %v1331_v45 = vadd.f32 %v1330_v42, %v5084_v33  ;;  %1679 = vmatprep.mubr.bf16.mxu0 %v1412_v39  ;;  %v1388_v56 = vmax.f32 %v1329_v44, 0.0 }
 0x289   : > { %v1332_v48 = vpop.f32.mrf.mxu1  ;;  %1680 = vmatmul.mubr.bf16.gmra.mxu0 %v1411_v41 }
 0x28a   : > { %v1333_v51 = vadd.f32 %v1332_v48, %v5081_v32  ;;  %2153 = vmatpush1.bf16.msra.mxu0 %v4161_v40  ;;  %v1389_v53 = vmax.f32 %v1331_v45, 0.0 }
 0x28b   : > { %v1336_v54 = vpop.f32.mrf.mxu1  ;;  %2154 = vmatprep.subr.bf16.mxu0 %v4166_v43 }
 0x28c   : > { %v1390_v57 = vmax.f32 %v1333_v51, 0.0  ;;  %v1413_v62 = vpack.c.bf16 %v1389_v53, %v1387_v58  ;;  %v1337_v4 = vadd.f32 %v1336_v54, %v5084_v33 }
 0x28d   : > { %v1338_v59 = vpop.f32.mrf.mxu1 }
 0x28e   : > { %v1414_v60 = vpack.c.bf16 %v1390_v57, %v1388_v56  ;;  %2155 = vmatpush1.bf16.msra.mxu0 %v4164_v52  ;;  %v1339_v2 = vadd.f32 %v1338_v59, %v5081_v32  ;;  %v1391_v12 = vmax.f32 %v1337_v4, 0.0  ;;  %v4305_v4 = vld [vmem:[%s4988_s2 + $0x20] sm:$0xff]  }
 0x28f   : > { %v1340_v63 = vpop.f32.mrf.mxu1  ;;  %2156 = vmatprep.subr.bf16.mxu0 %v4169_v55 }
 0x290   : > { %v1341_v3 = vadd.f32 %v1340_v63, %v5084_v33  ;;  %1689 = vmatprep.mubr.bf16.mxu0 %v1414_v60  ;;  %v1392_v10 = vmax.f32 %v1339_v2, 0.0  ;;  %v4188_v63 = vld [vmem:[#allocation10] sm:$0xff]   ;;  %v4303_v2 = vld [vmem:[%s4988_s2 + $0x10] sm:$0xff]  }
 0x291   : > { %v1342_v5 = vpop.f32.mrf.mxu1  ;;  %1690 = vmatmul.mubr.bf16.gmra.mxu0 %v1413_v62  ;;  %v4301_v62 = vld [vmem:[%s4988_s2] sm:$0xff]  }
 0x292   : > { %v1343_v6 = vadd.f32 %v1342_v5, %v5081_v32  ;;  %2157 = vmatpush1.bf16.msra.mxu0 %v4167_v61  ;;  %v1393_v8 = vmax.f32 %v1341_v3, 0.0  ;;  %v4304_v3 = vld [vmem:[%s4988_s2 + $0x18] sm:$0xff]   ;;  %v4306_v5 = vld [vmem:[%s4988_s2 + $0x28] sm:$0xff]  }
 0x293   : > { %v1346_v9 = vpop.f32.mrf.mxu1  ;;  %2158 = vmatprep.subr.bf16.mxu0 %v4172_v1  ;;  %v4191_v1 = vld [vmem:[#allocation13 + $0x74] ss:$8 sps:$4 sm:$0xff]  }
 0x294   : > { %v1394_v11 = vmax.f32 %v1343_v6, 0.0  ;;  %v1415_v15 = vpack.c.bf16 %v1393_v8, %v1391_v12  ;;  %v1347_v19 = vadd.f32 %v1346_v9, %v5084_v33  ;;  %v1455_v6 = vld [vmem:[%s5512_s6] sm:$0x3] }
 0x295   : > { %v1348_v13 = vpop.f32.mrf.mxu1  ;;  %v5138_v8 = vrot.slane %v1455_v6, %v5032_v22  ;;  %v5141_v9 = vrot.slane %v1455_v6, %v5034_v23 }
 0x296   : > { %v1416_v14 = vpack.c.bf16 %v1394_v11, %v1392_v10  ;;  %2159 = vmatpush1.bf16.msra.mxu0 %v4170_v7  ;;  %v1349_v17 = vadd.f32 %v1348_v13, %v5081_v32  ;;  %v1395_v29 = vmax.f32 %v1347_v19, 0.0 }
 0x297   : > { %v1350_v16 = vpop.f32.mrf.mxu1 }
 0x298   : > { %v1351_v18 = vadd.f32 %v1350_v16, %v5084_v33  ;;  %1699 = vmatprep.mubr.bf16.mxu0 %v1416_v14  ;;  %v1396_v28 = vmax.f32 %v1349_v17, 0.0 }
 0x299   : > { %v1352_v20 = vpop.f32.mrf.mxu1  ;;  %1700 = vmatmul.mubr.bf16.gmra.mxu0 %v1415_v15 }
 0x29a   : > { %v1353_v21 = vadd.f32 %v1352_v20, %v5081_v32  ;;  %v1397_v24 = vmax.f32 %v1351_v18, 0.0 }
 0x29b   : > { %v1356_v25 = vpop.f32.mrf.mxu1 }
 0x29c   : > { %v1398_v27 = vmax.f32 %v1353_v21, 0.0  ;;  %v1417_v31 = vpack.c.bf16 %v1397_v24, %v1395_v29  ;;  %v1357_v37 = vadd.f32 %v1356_v25, %v5084_v33  ;;  %v4189_v21 = vld [vmem:[#allocation13 + $0x70] ss:$8 sps:$4 sm:$0xff]  }
 0x29d   : > { %v1358_v26 = vpop.f32.mrf.mxu1 }
 0x29e   : > { %v1418_v30 = vpack.c.bf16 %v1398_v27, %v1396_v28  ;;  %v1359_v35 = vadd.f32 %v1358_v26, %v5081_v32  ;;  %v1399_v44 = vmax.f32 %v1357_v37, 0.0  ;;  %v4194_v28 = vld [vmem:[#allocation13 + $0x64] ss:$8 sps:$4 sm:$0xff]   ;;  %v4197_v37 = vld [vmem:[#allocation13 + $0x54] ss:$8 sps:$4 sm:$0xff]  }
 0x29f   : > { %v1360_v34 = vpop.f32.mrf.mxu1 }
 0x2a0   : > { %v1361_v36 = vadd.f32 %v1360_v34, %v5084_v33  ;;  %1709 = vmatprep.mubr.bf16.mxu0 %v1418_v30  ;;  %v1400_v42 = vmax.f32 %v1359_v35, 0.0  ;;  %v4192_v34 = vld [vmem:[#allocation13 + $0x60] ss:$8 sps:$4 sm:$0xff]  }
 0x2a1   : > { %v1362_v38 = vpop.f32.mrf.mxu1  ;;  %1710 = vmatmul.mubr.bf16.gmra.mxu0 %v1417_v31 }
 0x2a2   : > { %v1363_v39 = vadd.f32 %v1362_v38, %v5081_v32  ;;  %v1401_v40 = vmax.f32 %v1361_v36, 0.0 }
 0x2a3   : > { %v1366_v41 = vpop.f32.mrf.mxu1 }
 0x2a4   : > { %v1402_v43 = vmax.f32 %v1363_v39, 0.0  ;;  %v1419_v47 = vpack.c.bf16 %v1401_v40, %v1399_v44  ;;  %v1367_v53 = vadd.f32 %v1366_v41, %v5084_v33 }
 0x2a5   : > { %v1368_v45 = vpop.f32.mrf.mxu1 }
 0x2a6   : > { %v1420_v46 = vpack.c.bf16 %v1402_v43, %v1400_v42  ;;  %v1369_v51 = vadd.f32 %v1368_v45, %v5081_v32  ;;  %v1403_v59 = vmax.f32 %v1367_v53, 0.0  ;;  %v4195_v43 = vld [vmem:[#allocation13 + $0x50] ss:$8 sps:$4 sm:$0xff]  }
 0x2a7   : > { %v1370_v48 = vpop.f32.mrf.mxu1 }
 0x2a8   : > { %v1371_v52 = vadd.f32 %v1370_v48, %v5084_v33  ;;  %1719 = vmatprep.mubr.bf16.mxu0 %v1420_v46  ;;  %v1404_v57 = vmax.f32 %v1369_v51, 0.0  ;;  %v4302_v33 = vld [vmem:[%s4988_s2 + $0x8] sm:$0xff]   ;;  %s4669_s2 = smov [#allocation17]  }
 0x2a9   : > { %v1372_v54 = vpop.f32.mrf.mxu1  ;;  %1720 = vmatmul.mubr.bf16.gmra.mxu0 %v1419_v47  ;;  %v4200_v46 = vld [vmem:[#allocation13 + $0x44] ss:$8 sps:$4 sm:$0xff]   ;;  %s4547_s5 = sshll.u32 %s4669_s2, 4  ;;  %s4548_s5 = int_to_ptr.vmem [resolvable:$false] %s4547_s5 }
 0x2aa   : > { %v1373_v55 = vadd.f32 %v1372_v54, %v5081_v32  ;;  %v1405_v56 = vmax.f32 %v1371_v52, 0.0  ;;  %v4187_v32 = vld [vmem:[#allocation10 + $0x40] sm:$0xff]   ;;  %p4550_p1 = scmp.lt.s32.totalorder %s5385_s20, %s4548_s5 }
 0x2ab   : > { %3752 = vmatprep.subr.bf16.mxu1 %v4187_v32  ;;  %v4198_v54 = vld [vmem:[#allocation13 + $0x40] ss:$8 sps:$4 sm:$0xff]  }
 0x2ac   : > { %v1406_v58 = vmax.f32 %v1373_v55, 0.0  ;;  %v1421_v61 = vpack.c.bf16 %v1405_v56, %v1403_v59  ;;  %3753 = vmatpush3.bf16.msra.mxu1 %v4188_v63 }
 0x2ad   : > { %2509 = vmatprep.subr.bf16.mxu1 %v4191_v1  ;;  %v4206_v1 = vld [vmem:[#allocation13 + $0x24] ss:$8 sps:$4 sm:$0xff]  }
 0x2ae   : > { %v1422_v60 = vpack.c.bf16 %v1406_v58, %v1404_v57  ;;  %v4203_v57 = vld [vmem:[#allocation13 + $0x34] ss:$8 sps:$4 sm:$0xff]  }
 0x2b0   : > { %1729 = vmatprep.mubr.bf16.mxu0 %v1422_v60 }
 0x2b1   : > { %1730 = vmatmul.mubr.bf16.gmra.mxu0 %v1421_v61 }
 0x2b2   : > { %2176 = vmatprep.mubr.bf16.mxu0 %v4668_v0 }
 0x2b9   : > { %2177 = vmatmul.mubr.bf16.vlgmr.msra.gmra.mxu0 %v4301_v62 }
 0x2ba   : > { %2186 = vmatprep.mubr.bf16.mxu0 %v4668_v0 }
 0x2c1   : > { %2187 = vmatmul.mubr.bf16.gmra.mxu0 %v4302_v33  ;;  %v4201_v33 = vld [vmem:[#allocation13 + $0x30] ss:$8 sps:$4 sm:$0xff]  }
 0x2c2   : > { %2196 = vmatprep.mubr.bf16.mxu0 %v4668_v0 }
 0x2c9   : > { %2197 = vmatmul.mubr.bf16.gmra.mxu0 %v4303_v2 }
 0x2ca   : > { %2206 = vmatprep.mubr.bf16.mxu0 %v4668_v0 }
 0x2d1   : > { %2207 = vmatmul.mubr.bf16.gmra.mxu0 %v4304_v3 }
 0x2d2   : > { %2216 = vmatprep.mubr.bf16.mxu0 %v4668_v0 }
 0x2d9   : > { %2217 = vmatmul.mubr.bf16.gmra.mxu0 %v4305_v4 }
 0x2da   : > { %2226 = vmatprep.mubr.bf16.mxu0 %v4668_v0 }
 0x2e1   : > { %2227 = vmatmul.mubr.bf16.gmra.mxu0 %v4306_v5 }
 0x2e2   : > { %2236 = vmatprep.mubr.bf16.mxu0 %v4668_v0 }
 0x2e9   : > { %2237 = vmatmul.mubr.bf16.gmra.mxu0 %v5024_v49 }
 0x2ea   : > { %2246 = vmatprep.mubr.bf16.mxu0 %v4668_v0 }
 0x2f1   : > { %2247 = vmatmul.mubr.bf16.gmra.mxu0 %v5029_v50 }
 0x339   : > { %v1661_v7 = vpop.f32.mrf.mxu0 }
 0x33a   : > { %v1662_v0 = vadd.f32 %v1661_v7, %v5141_v9  ;;  %v4204_v7 = vld [vmem:[#allocation13 + $0x20] ss:$8 sps:$4 sm:$0xff]  }
 0x33b   : > { %v1663_v10 = vpop.f32.mrf.mxu0 }
 0x33c   : > { %v1664_v12 = vadd.f32 %v1663_v10, %v5138_v8  ;;  %v1740_v18 = vmax.f32 %v1662_v0, 0.0 }
 0x33d   : > { %v1665_v11 = vpop.f32.mrf.mxu0 }
 0x33e   : > { %v1666_v49 = vadd.f32 %v1665_v11, %v5141_v9  ;;  %v1741_v16 = vmax.f32 %v1664_v12, 0.0  ;;  %v4209_v12 = vld [vmem:[#allocation13 + $0x14] ss:$8 sps:$4 sm:$0xff]  }
 0x33f   : > { %v1667_v50 = vpop.f32.mrf.mxu0 }
 0x340   : > { %v1668_v13 = vadd.f32 %v1667_v50, %v5138_v8  ;;  %v1742_v14 = vmax.f32 %v1666_v49, 0.0 }
 0x341   : > { %v1671_v15 = vpop.f32.mrf.mxu0 }
 0x342   : > { %v1743_v17 = vmax.f32 %v1668_v13, 0.0  ;;  %v1772_v24 = vpack.c.bf16 %v1742_v14, %v1740_v18  ;;  %v1672_v26 = vadd.f32 %v1671_v15, %v5141_v9  ;;  %v4207_v15 = vld [vmem:[#allocation13 + $0x10] ss:$8 sps:$4 sm:$0xff]   ;;  %v4212_v18 = vld [vmem:[#allocation13 + $0x4] ss:$8 sps:$4 sm:$0xff]  }
 0x343   : > { %v1673_v19 = vpop.f32.mrf.mxu0 }
 0x344   : > { %v1773_v20 = vpack.c.bf16 %v1743_v17, %v1741_v16  ;;  %v1674_v27 = vadd.f32 %v1673_v19, %v5138_v8  ;;  %v1744_v40 = vmax.f32 %v1672_v26, 0.0  ;;  %v4215_v26 = vld [vmem:[#allocation13 + $0xf4] ss:$8 sps:$4 sm:$0xff]  }
 0x345   : > { %v1675_v25 = vpop.f32.mrf.mxu0 }
 0x346   : > { %v1676_v29 = vadd.f32 %v1675_v25, %v5141_v9  ;;  %1955 = vmatprep.mubr.bf16.mxu1 %v1773_v20  ;;  %v1745_v38 = vmax.f32 %v1674_v27, 0.0 }
 0x347   : > { %v1677_v30 = vpop.f32.mrf.mxu0  ;;  %1956 = vmatmul.mubr.bf16.vlgmr.msra.gmra.mxu1 %v1772_v24 }
 0x348   : > { %v1678_v31 = vadd.f32 %v1677_v30, %v5138_v8  ;;  %2510 = vmatpush1.bf16.msra.mxu1 %v4189_v21  ;;  %v1746_v35 = vmax.f32 %v1676_v29, 0.0 }
 0x349   : > { %v1681_v36 = vpop.f32.mrf.mxu0  ;;  %2511 = vmatprep.subr.bf16.mxu1 %v4194_v28  ;;  %v4210_v28 = vld [vmem:[#allocation13] ss:$8 sps:$4 sm:$0xff]  }
 0x34a   : > { %v1747_v39 = vmax.f32 %v1678_v31, 0.0  ;;  %v1774_v44 = vpack.c.bf16 %v1746_v35, %v1744_v40  ;;  %v1682_v51 = vadd.f32 %v1681_v36, %v5141_v9  ;;  %v4218_v40 = vld [vmem:[#allocation13 + $0xe4] ss:$8 sps:$4 sm:$0xff]  }
 0x34b   : > { %v1683_v41 = vpop.f32.mrf.mxu0 }
 0x34c   : > { %v1775_v42 = vpack.c.bf16 %v1747_v39, %v1745_v38  ;;  %2512 = vmatpush1.bf16.msra.mxu1 %v4192_v34  ;;  %v1684_v47 = vadd.f32 %v1683_v41, %v5138_v8  ;;  %v1748_v60 = vmax.f32 %v1682_v51, 0.0  ;;  %v4221_v51 = vld [vmem:[#allocation13 + $0xd4] ss:$8 sps:$4 sm:$0xff]  }
 0x34d   : > { %v1685_v45 = vpop.f32.mrf.mxu0  ;;  %2513 = vmatprep.subr.bf16.mxu1 %v4197_v37  ;;  %v4213_v37 = vld [vmem:[#allocation13 + $0xf0] ss:$8 sps:$4 sm:$0xff]  }
 0x34e   : > { %v1686_v48 = vadd.f32 %v1685_v45, %v5141_v9  ;;  %1963 = vmatprep.mubr.bf16.mxu1 %v1775_v42  ;;  %v1749_v58 = vmax.f32 %v1684_v47, 0.0 }
 0x34f   : > { %v1687_v52 = vpop.f32.mrf.mxu0  ;;  %1964 = vmatmul.mubr.bf16.gmra.mxu1 %v1774_v44 }
 0x350   : > { %v1688_v53 = vadd.f32 %v1687_v52, %v5138_v8  ;;  %2514 = vmatpush1.bf16.msra.mxu1 %v4195_v43  ;;  %v1750_v55 = vmax.f32 %v1686_v48, 0.0 }
 0x351   : > { %v1691_v56 = vpop.f32.mrf.mxu0  ;;  %2515 = vmatprep.subr.bf16.mxu1 %v4200_v46  ;;  %v4216_v46 = vld [vmem:[#allocation13 + $0xe0] ss:$8 sps:$4 sm:$0xff]  }
 0x352   : > { %v1751_v59 = vmax.f32 %v1688_v53, 0.0  ;;  %v1776_v32 = vpack.c.bf16 %v1750_v55, %v1748_v60  ;;  %v1692_v4 = vadd.f32 %v1691_v56, %v5141_v9  ;;  %v4224_v60 = vld [vmem:[#allocation13 + $0xc4] ss:$8 sps:$4 sm:$0xff]  }
 0x353   : > { %v1693_v61 = vpop.f32.mrf.mxu0 }
 0x354   : > { %v1777_v62 = vpack.c.bf16 %v1751_v59, %v1749_v58  ;;  %2516 = vmatpush1.bf16.msra.mxu1 %v4198_v54  ;;  %v1694_v2 = vadd.f32 %v1693_v61, %v5138_v8  ;;  %v1752_v50 = vmax.f32 %v1692_v4, 0.0  ;;  %v4227_v4 = vld [vmem:[#allocation13 + $0xb4] ss:$8 sps:$4 sm:$0xff]  }
 0x355   : > { %v1695_v63 = vpop.f32.mrf.mxu0  ;;  %2517 = vmatprep.subr.bf16.mxu1 %v4203_v57  ;;  %v4219_v57 = vld [vmem:[#allocation13 + $0xd0] ss:$8 sps:$4 sm:$0xff]  }
 0x356   : > { %v1696_v3 = vadd.f32 %v1695_v63, %v5141_v9  ;;  %1971 = vmatprep.mubr.bf16.mxu1 %v1777_v62  ;;  %v1753_v49 = vmax.f32 %v1694_v2, 0.0 }
 0x357   : > { %v1697_v5 = vpop.f32.mrf.mxu0  ;;  %1972 = vmatmul.mubr.bf16.gmra.mxu1 %v1776_v32 }
 0x358   : > { %v1698_v6 = vadd.f32 %v1697_v5, %v5138_v8  ;;  %2518 = vmatpush1.bf16.msra.mxu1 %v4201_v33  ;;  %v1754_v10 = vmax.f32 %v1696_v3, 0.0 }
 0x359   : > { %v1701_v11 = vpop.f32.mrf.mxu0  ;;  %2519 = vmatprep.subr.bf16.mxu1 %v4206_v1  ;;  %v4222_v1 = vld [vmem:[#allocation13 + $0xc0] ss:$8 sps:$4 sm:$0xff]  }
 0x35a   : > { %v1755_v0 = vmax.f32 %v1698_v6, 0.0  ;;  %v1778_v16 = vpack.c.bf16 %v1754_v10, %v1752_v50  ;;  %v1702_v21 = vadd.f32 %v1701_v11, %v5141_v9  ;;  %v4230_v50 = vld [vmem:[#allocation13 + $0xa4] ss:$8 sps:$4 sm:$0xff]  }
 0x35b   : > { %v1703_v13 = vpop.f32.mrf.mxu0 }
 0x35c   : > { %v1779_v14 = vpack.c.bf16 %v1755_v0, %v1753_v49  ;;  %2520 = vmatpush1.bf16.msra.mxu1 %v4204_v7  ;;  %v1704_v19 = vadd.f32 %v1703_v13, %v5138_v8  ;;  %v1756_v34 = vmax.f32 %v1702_v21, 0.0 }
 0x35d   : > { %v1705_v17 = vpop.f32.mrf.mxu0  ;;  %2521 = vmatprep.subr.bf16.mxu1 %v4209_v12  ;;  %v4225_v12 = vld [vmem:[#allocation13 + $0xb0] ss:$8 sps:$4 sm:$0xff]  }
 0x35e   : > { %v1706_v20 = vadd.f32 %v1705_v17, %v5141_v9  ;;  %1979 = vmatprep.mubr.bf16.mxu1 %v1779_v14  ;;  %v1757_v30 = vmax.f32 %v1704_v19, 0.0  ;;  %v4228_v19 = vld [vmem:[#allocation13 + $0xa0] ss:$8 sps:$4 sm:$0xff]  }
 0x35f   : > { %v1707_v24 = vpop.f32.mrf.mxu0  ;;  %1980 = vmatmul.mubr.bf16.gmra.mxu1 %v1778_v16 }
 0x360   : > { %v1708_v25 = vadd.f32 %v1707_v24, %v5138_v8  ;;  %2522 = vmatpush1.bf16.msra.mxu1 %v4207_v15  ;;  %v1758_v27 = vmax.f32 %v1706_v20, 0.0  ;;  %v4233_v24 = vld [vmem:[#allocation13 + $0x94] ss:$8 sps:$4 sm:$0xff]  }
 0x361   : > { %v1711_v29 = vpop.f32.mrf.mxu0  ;;  %2523 = vmatprep.subr.bf16.mxu1 %v4212_v18  ;;  %v2052_v18 = vld [vmem:[%s5516_s10] sm:$0x3] }
 0x362   : > { %v1759_v31 = vmax.f32 %v1708_v25, 0.0  ;;  %v1780_v38 = vpack.c.bf16 %v1758_v27, %v1756_v34  ;;  %v1712_v43 = vadd.f32 %v1711_v29, %v5141_v9  ;;  %v5179_v27 = vrot.slane %v2052_v18, %v5032_v22 }
 0x363   : > { %v1713_v35 = vpop.f32.mrf.mxu0  ;;  %v5182_v29 = vrot.slane %v2052_v18, %v5034_v23 }
 0x364   : > { %v1781_v36 = vpack.c.bf16 %v1759_v31, %v1757_v30  ;;  %2524 = vmatpush1.bf16.msra.mxu1 %v4210_v28  ;;  %v1714_v41 = vadd.f32 %v1713_v35, %v5138_v8  ;;  %v1760_v54 = vmax.f32 %v1712_v43, 0.0  ;;  %v4231_v30 = vld [vmem:[#allocation13 + $0x90] ss:$8 sps:$4 sm:$0xff]   ;;  %v4236_v35 = vld [vmem:[#allocation13 + $0x84] ss:$8 sps:$4 sm:$0xff]  }
 0x365   : > { %v1715_v39 = vpop.f32.mrf.mxu0  ;;  %2525 = vmatprep.subr.bf16.mxu1 %v4215_v26 }
 0x366   : > { %v1716_v42 = vadd.f32 %v1715_v39, %v5141_v9  ;;  %1987 = vmatprep.mubr.bf16.mxu1 %v1781_v36  ;;  %v1761_v52 = vmax.f32 %v1714_v41, 0.0  ;;  %v4234_v41 = vld [vmem:[#allocation13 + $0x80] ss:$8 sps:$4 sm:$0xff]  }
 0x367   : > { %v1717_v44 = vpop.f32.mrf.mxu0  ;;  %1988 = vmatmul.mubr.bf16.gmra.mxu1 %v1780_v38 }
 0x368   : > { %v1718_v45 = vadd.f32 %v1717_v44, %v5138_v8  ;;  %2526 = vmatpush2.bf16.msra.mxu1 %v4213_v37  ;;  %v1762_v47 = vmax.f32 %v1716_v42, 0.0 }
 0x369   : > { %v1721_v48 = vpop.f32.mrf.mxu0  ;;  %2527 = vmatprep.subr.bf16.mxu1 %v4218_v40 }
 0x36a   : > { %v1763_v53 = vmax.f32 %v1718_v45, 0.0  ;;  %v1782_v58 = vpack.c.bf16 %v1762_v47, %v1760_v54  ;;  %v1722_v33 = vadd.f32 %v1721_v48, %v5141_v9 }
 0x36b   : > { %v1723_v55 = vpop.f32.mrf.mxu0 }
 0x36c   : > { %v1783_v56 = vpack.c.bf16 %v1763_v53, %v1761_v52  ;;  %2528 = vmatpush2.bf16.msra.mxu1 %v4216_v46  ;;  %v1724_v61 = vadd.f32 %v1723_v55, %v5138_v8  ;;  %v1764_v7 = vmax.f32 %v1722_v33, 0.0 }
 0x36d   : > { %v1725_v59 = vpop.f32.mrf.mxu0  ;;  %2529 = vmatprep.subr.bf16.mxu1 %v4221_v51 }
 0x36e   : > { %v1726_v62 = vadd.f32 %v1725_v59, %v5141_v9  ;;  %1995 = vmatprep.mubr.bf16.mxu1 %v1783_v56  ;;  %v1765_v5 = vmax.f32 %v1724_v61, 0.0 }
 0x36f   : > { %v1727_v32 = vpop.f32.mrf.mxu0  ;;  %1996 = vmatmul.mubr.bf16.gmra.mxu1 %v1782_v58 }
 0x370   : > { %v1728_v63 = vadd.f32 %v1727_v32, %v5138_v8  ;;  %2530 = vmatpush2.bf16.msra.mxu1 %v4219_v57  ;;  %v1766_v2 = vmax.f32 %v1726_v62, 0.0 }
 0x371   : > { %v1731_v3 = vpop.f32.mrf.mxu0  ;;  %2531 = vmatprep.subr.bf16.mxu1 %v4224_v60 }
 0x372   : > { %v1767_v6 = vmax.f32 %v1728_v63, 0.0  ;;  %v1784_v49 = vpack.c.bf16 %v1766_v2, %v1764_v7  ;;  %v1732_v15 = vadd.f32 %v1731_v3, %v5141_v9 }
 0x373   : > { %v1733_v10 = vpop.f32.mrf.mxu0 }
 0x374   : > { %v1785_v11 = vpack.c.bf16 %v1767_v6, %v1765_v5  ;;  %2532 = vmatpush2.bf16.msra.mxu1 %v4222_v1  ;;  %v1734_v13 = vadd.f32 %v1733_v10, %v5138_v8 }
 0x375   : > { %v1735_v0 = vpop.f32.mrf.mxu0  ;;  %2533 = vmatprep.subr.bf16.mxu1 %v4227_v4 }
 0x376   : > { %v1736_v14 = vadd.f32 %v1735_v0, %v5141_v9  ;;  %2003 = vmatprep.mubr.bf16.mxu1 %v1785_v11  ;;  %v1769_v25 = vmax.f32 %v1734_v13, 0.0  ;;  %v1768_v9 = vmax.f32 %v1732_v15, 0.0 }
 0x377   : > { %v1737_v16 = vpop.f32.mrf.mxu0  ;;  %2004 = vmatmul.mubr.bf16.gmra.mxu1 %v1784_v49 }
 0x378   : > { %v1738_v17 = vadd.f32 %v1737_v16, %v5138_v8  ;;  %2534 = vmatpush2.bf16.msra.mxu1 %v4225_v12  ;;  %v1770_v20 = vmax.f32 %v1736_v14, 0.0  ;;  %v4237_v14 = vld [vmem:[#allocation14 + $0x70] ss:$8 sps:$4 sm:$0xff]  }
 0x379   : > { %v2178_v21 = vpop.f32.mrf.mxu0  ;;  %2535 = vmatprep.subr.bf16.mxu1 %v4230_v50  ;;  %v4239_v50 = vld [vmem:[#allocation14 + $0x74] ss:$8 sps:$4 sm:$0xff]  }
 0x37a   : > { %v1771_v28 = vmax.f32 %v1738_v17, 0.0  ;;  %v1786_v31 = vpack.c.bf16 %v1770_v20, %v1768_v9  ;;  %v2179_v38 = vadd.f32 %v2178_v21, %v5182_v29  ;;  %2874 = vmatprep.subr.bf16.mxu0 %v4239_v50  ;;  %v4242_v21 = vld [vmem:[#allocation14 + $0x64] ss:$8 sps:$4 sm:$0xff]  }
 0x37b   : > { %v2180_v8 = vpop.f32.mrf.mxu0  ;;  %2875 = vmatpush1.bf16.msra.mxu0 %v4237_v14 }
 0x37c   : > { %v1787_v26 = vpack.c.bf16 %v1771_v28, %v1769_v25  ;;  %2536 = vmatpush2.bf16.msra.mxu1 %v4228_v19  ;;  %v2181_v36 = vadd.f32 %v2180_v8, %v5179_v27  ;;  %v2257_v46 = vmax.f32 %v2179_v38, 0.0  ;;  %v4240_v25 = vld [vmem:[#allocation14 + $0x60] ss:$8 sps:$4 sm:$0xff]   ;;  %2876 = vmatprep.subr.bf16.mxu0 %v4242_v21 }
 0x37d   : > { %v2182_v34 = vpop.f32.mrf.mxu0  ;;  %2537 = vmatprep.subr.bf16.mxu1 %v4233_v24 }
 0x37e   : > { %v2183_v37 = vadd.f32 %v2182_v34, %v5182_v29  ;;  %2011 = vmatprep.mubr.bf16.mxu1 %v1787_v26  ;;  %v2258_v44 = vmax.f32 %v2181_v36, 0.0  ;;  %v4245_v34 = vld [vmem:[#allocation14 + $0x54] ss:$8 sps:$4 sm:$0xff]   ;;  %v4243_v36 = vld [vmem:[#allocation14 + $0x50] ss:$8 sps:$4 sm:$0xff]  }
 0x37f   : > { %2012 = vmatmul.mubr.bf16.gmra.mxu1 %v1786_v31  ;;  %v2184_v39 = vpop.f32.mrf.mxu0  ;;  %2877 = vmatpush1.bf16.msra.mxu0 %v4240_v25 }
 0x380   : > { %v2185_v40 = vadd.f32 %v2184_v39, %v5179_v27  ;;  %2538 = vmatpush2.bf16.msra.mxu1 %v4231_v30  ;;  %v2259_v42 = vmax.f32 %v2183_v37, 0.0  ;;  %2878 = vmatprep.subr.bf16.mxu0 %v4245_v34 }
 0x381   : > { %v2188_v43 = vpop.f32.mrf.mxu0  ;;  %2539 = vmatprep.subr.bf16.mxu1 %v4236_v35 }
 0x382   : > { %v2260_v45 = vmax.f32 %v2185_v40, 0.0  ;;  %v2289_v51 = vpack.c.bf16 %v2259_v42, %v2257_v46  ;;  %v2189_v55 = vadd.f32 %v2188_v43, %v5182_v29  ;;  %v4248_v43 = vld [vmem:[#allocation14 + $0x44] ss:$8 sps:$4 sm:$0xff]  }
 0x383   : > { %v2190_v47 = vpop.f32.mrf.mxu0  ;;  %2879 = vmatpush1.bf16.msra.mxu0 %v4243_v36 }
 0x384   : > { %v2290_v48 = vpack.c.bf16 %v2260_v45, %v2258_v44  ;;  %2540 = vmatpush2.bf16.msra.mxu1 %v4234_v41  ;;  %v2191_v53 = vadd.f32 %v2190_v47, %v5179_v27  ;;  %v2261_v62 = vmax.f32 %v2189_v55, 0.0  ;;  %v4246_v45 = vld [vmem:[#allocation14 + $0x40] ss:$8 sps:$4 sm:$0xff]   ;;  %2880 = vmatprep.subr.bf16.mxu0 %v4248_v43 }
 0x385   : > { %v2192_v52 = vpop.f32.mrf.mxu0 }
 0x386   : > { %v2193_v54 = vadd.f32 %v2192_v52, %v5182_v29  ;;  %2541 = vmatprep.mubr.bf16.mxu1 %v2290_v48  ;;  %v2262_v60 = vmax.f32 %v2191_v53, 0.0 }
 0x387   : > { %v2194_v56 = vpop.f32.mrf.mxu0  ;;  %2542 = vmatmul.mubr.bf16.vlgmr.msra.gmra.mxu1 %v2289_v51  ;;  %2881 = vmatpush1.bf16.msra.mxu0 %v4246_v45 }
 0x388   : > { %v2195_v57 = vadd.f32 %v2194_v56, %v5179_v27  ;;  %v2263_v58 = vmax.f32 %v2193_v54, 0.0  ;;  %v4251_v54 = vld [vmem:[#allocation14 + $0x34] ss:$8 sps:$4 sm:$0xff]   ;;  %v4249_v56 = vld [vmem:[#allocation14 + $0x30] ss:$8 sps:$4 sm:$0xff]  }
 0x389   : > { %v2198_v59 = vpop.f32.mrf.mxu0  ;;  %2882 = vmatprep.subr.bf16.mxu0 %v4251_v54  ;;  %v4281_v54 = vld [vmem:[#allocation14 + $0x94] ss:$8 sps:$4 sm:$0xff]  }
 0x38a   : > { %v2264_v61 = vmax.f32 %v2195_v57, 0.0  ;;  %v2291_v63 = vpack.c.bf16 %v2263_v58, %v2261_v62  ;;  %v2199_v4 = vadd.f32 %v2198_v59, %v5182_v29 }
 0x38b   : > { %v2200_v33 = vpop.f32.mrf.mxu0  ;;  %2883 = vmatpush1.bf16.msra.mxu0 %v4249_v56  ;;  %v4284_v56 = vld [vmem:[#allocation14 + $0x84] ss:$8 sps:$4 sm:$0xff]  }
 0x38c   : > { %v2292_v32 = vpack.c.bf16 %v2264_v61, %v2262_v60  ;;  %v2201_v2 = vadd.f32 %v2200_v33, %v5179_v27  ;;  %v2265_v49 = vmax.f32 %v2199_v4, 0.0  ;;  %v4254_v33 = vld [vmem:[#allocation14 + $0x24] ss:$8 sps:$4 sm:$0xff]  }
 0x38d   : > { %v2202_v1 = vpop.f32.mrf.mxu0  ;;  %2884 = vmatprep.subr.bf16.mxu0 %v4254_v33 }
 0x38e   : > { %v2203_v3 = vadd.f32 %v2202_v1, %v5182_v29  ;;  %2551 = vmatprep.mubr.bf16.mxu1 %v2292_v32  ;;  %v2266_v11 = vmax.f32 %v2201_v2, 0.0 }
 0x38f   : > { %v2204_v5 = vpop.f32.mrf.mxu0  ;;  %2552 = vmatmul.mubr.bf16.gmra.mxu1 %v2291_v63  ;;  %v4252_v63 = vld [vmem:[#allocation14 + $0x20] ss:$8 sps:$4 sm:$0xff]  }
 0x390   : > { %v2205_v6 = vadd.f32 %v2204_v5, %v5179_v27  ;;  %v2267_v7 = vmax.f32 %v2203_v3, 0.0  ;;  %2885 = vmatpush1.bf16.msra.mxu0 %v4252_v63  ;;  %v4285_v63 = vld [vmem:[#allocation16 + $0x78] sm:$0xff]  }
 0x391   : > { %v2208_v10 = vpop.f32.mrf.mxu0  ;;  %3866 = vmatprep.subr.bf16.mxu1 %v4285_v63 }
 0x392   : > { %v2268_v12 = vmax.f32 %v2205_v6, 0.0  ;;  %v2293_v15 = vpack.c.bf16 %v2267_v7, %v2265_v49  ;;  %v2209_v19 = vadd.f32 %v2208_v10, %v5182_v29  ;;  %v4257_v7 = vld [vmem:[#allocation14 + $0x14] ss:$8 sps:$4 sm:$0xff]  }
 0x393   : > { %v2210_v0 = vpop.f32.mrf.mxu0  ;;  %2886 = vmatprep.subr.bf16.mxu0 %v4257_v7 }
 0x394   : > { %v2294_v13 = vpack.c.bf16 %v2268_v12, %v2266_v11  ;;  %v2211_v17 = vadd.f32 %v2210_v0, %v5179_v27  ;;  %v2269_v30 = vmax.f32 %v2209_v19, 0.0  ;;  %v4255_v11 = vld [vmem:[#allocation14 + $0x10] ss:$8 sps:$4 sm:$0xff]  }
 0x395   : > { %v2212_v16 = vpop.f32.mrf.mxu0  ;;  %2887 = vmatpush1.bf16.msra.mxu0 %v4255_v11 }
 0x396   : > { %v2213_v18 = vadd.f32 %v2212_v16, %v5182_v29  ;;  %2561 = vmatprep.mubr.bf16.mxu1 %v2294_v13  ;;  %v2270_v8 = vmax.f32 %v2211_v17, 0.0  ;;  %v4258_v17 = vld [vmem:[#allocation14] ss:$8 sps:$4 sm:$0xff]  }
 0x397   : > { %v2214_v20 = vpop.f32.mrf.mxu0  ;;  %2562 = vmatmul.mubr.bf16.gmra.mxu1 %v2293_v15  ;;  %v4260_v15 = vld [vmem:[#allocation14 + $0x4] ss:$8 sps:$4 sm:$0xff]  }
 0x398   : > { %v2215_v24 = vadd.f32 %v2214_v20, %v5179_v27  ;;  %v2271_v28 = vmax.f32 %v2213_v18, 0.0  ;;  %2888 = vmatprep.subr.bf16.mxu0 %v4260_v15  ;;  %v5246_v15 = vld [vmem:[#allocation16 + $0x60] sm:$0xff]  }
 0x399   : > { %v2218_v9 = vpop.f32.mrf.mxu0  ;;  %2889 = vmatpush1.bf16.msra.mxu0 %v4258_v17 }
 0x39a   : > { %v2272_v26 = vmax.f32 %v2215_v24, 0.0  ;;  %v2295_v37 = vpack.c.bf16 %v2271_v28, %v2269_v30  ;;  %v2219_v41 = vadd.f32 %v2218_v9, %v5182_v29  ;;  %v4263_v28 = vld [vmem:[#allocation14 + $0xf4] ss:$8 sps:$4 sm:$0xff]  }
 0x39b   : > { %v2220_v31 = vpop.f32.mrf.mxu0  ;;  %2890 = vmatprep.subr.bf16.mxu0 %v4263_v28 }
 0x39c   : > { %v2296_v35 = vpack.c.bf16 %v2272_v26, %v2270_v8  ;;  %v2221_v39 = vadd.f32 %v2220_v31, %v5179_v27  ;;  %v2273_v52 = vmax.f32 %v2219_v41, 0.0  ;;  %v4261_v8 = vld [vmem:[#allocation14 + $0xf0] ss:$8 sps:$4 sm:$0xff]  }
 0x39d   : > { %v2222_v38 = vpop.f32.mrf.mxu0  ;;  %2891 = vmatpush2.bf16.msra.mxu0 %v4261_v8 }
 0x39e   : > { %v2223_v40 = vadd.f32 %v2222_v38, %v5182_v29  ;;  %2571 = vmatprep.mubr.bf16.mxu1 %v2296_v35  ;;  %v2274_v48 = vmax.f32 %v2221_v39, 0.0  ;;  %v4264_v39 = vld [vmem:[#allocation14 + $0xe0] ss:$8 sps:$4 sm:$0xff]  }
 0x39f   : > { %v2224_v42 = vpop.f32.mrf.mxu0  ;;  %2572 = vmatmul.mubr.bf16.gmra.mxu1 %v2295_v37  ;;  %v4266_v37 = vld [vmem:[#allocation14 + $0xe4] ss:$8 sps:$4 sm:$0xff]  }
 0x3a0   : > { %v2225_v44 = vadd.f32 %v2224_v42, %v5179_v27  ;;  %v2275_v46 = vmax.f32 %v2223_v40, 0.0  ;;  %2892 = vmatprep.subr.bf16.mxu0 %v4266_v37 }
 0x3a1   : > { %v2228_v47 = vpop.f32.mrf.mxu0  ;;  %2893 = vmatpush2.bf16.msra.mxu0 %v4264_v39 }
 0x3a2   : > { %v2276_v51 = vmax.f32 %v2225_v44, 0.0  ;;  %v2297_v57 = vpack.c.bf16 %v2275_v46, %v2273_v52  ;;  %v2229_v61 = vadd.f32 %v2228_v47, %v5182_v29  ;;  %v4269_v44 = vld [vmem:[#allocation14 + $0xd4] ss:$8 sps:$4 sm:$0xff]   ;;  %v4267_v46 = vld [vmem:[#allocation14 + $0xd0] ss:$8 sps:$4 sm:$0xff]  }
 0x3a3   : > { %v2230_v53 = vpop.f32.mrf.mxu0  ;;  %2894 = vmatprep.subr.bf16.mxu0 %v4269_v44  ;;  %v4278_v52 = vld [vmem:[#allocation14 + $0xa4] ss:$8 sps:$4 sm:$0xff]  }
 0x3a4   : > { %v2298_v55 = vpack.c.bf16 %v2276_v51, %v2274_v48  ;;  %v2231_v59 = vadd.f32 %v2230_v53, %v5179_v27  ;;  %v2277_v5 = vmax.f32 %v2229_v61, 0.0  ;;  %v4270_v48 = vld [vmem:[#allocation14 + $0xc0] ss:$8 sps:$4 sm:$0xff]   ;;  %v4273_v51 = vld [vmem:[#allocation14 + $0xb0] ss:$8 sps:$4 sm:$0xff]  }
 0x3a5   : > { %v2232_v58 = vpop.f32.mrf.mxu0  ;;  %2895 = vmatpush2.bf16.msra.mxu0 %v4267_v46  ;;  %v4276_v53 = vld [vmem:[#allocation14 + $0xa0] ss:$8 sps:$4 sm:$0xff]  }
 0x3a6   : > { %v2233_v60 = vadd.f32 %v2232_v58, %v5182_v29  ;;  %2581 = vmatprep.mubr.bf16.mxu1 %v2298_v55  ;;  %v2278_v3 = vmax.f32 %v2231_v59, 0.0  ;;  %v4279_v55 = vld [vmem:[#allocation14 + $0x90] ss:$8 sps:$4 sm:$0xff]   ;;  %v5220_v59 = vld [vmem:[%s5514_s8] ss:$0 sm:$0xff] }
 0x3a7   : > { %v2234_v62 = vpop.f32.mrf.mxu0  ;;  %2582 = vmatmul.mubr.bf16.gmra.mxu1 %v2297_v57  ;;  %v4282_v57 = vld [vmem:[#allocation14 + $0x80] ss:$8 sps:$4 sm:$0xff]  }
 0x3a8   : > { %v2235_v32 = vadd.f32 %v2234_v62, %v5179_v27  ;;  %v2279_v1 = vmax.f32 %v2233_v60, 0.0 }
 0x3a9   : > { %v2238_v2 = vpop.f32.mrf.mxu0 }
 0x3aa   : > { %v2280_v4 = vmax.f32 %v2235_v32, 0.0  ;;  %v2299_v12 = vpack.c.bf16 %v2279_v1, %v2277_v5  ;;  %v2239_v13 = vadd.f32 %v2238_v2, %v5182_v29  ;;  %v5228_v2 = vld [vmem:[#allocation16 + $0x38] sm:$0xff]  }
 0x3ab   : > { %v2240_v6 = vpop.f32.mrf.mxu0  ;;  %3874 = vmatpush3.bf16.msra.mxu1 %v5228_v2 }
 0x3ac   : > { %v2300_v10 = vpack.c.bf16 %v2280_v4, %v2278_v3  ;;  %v2241_v0 = vadd.f32 %v2240_v6, %v5179_v27  ;;  %v2281_v24 = vmax.f32 %v2239_v13, 0.0  ;;  %v5230_v4 = vld [vmem:[#allocation16 + $0x70] sm:$0xff]   ;;  %v5244_v13 = vld [vmem:[#allocation16 + $0x28] sm:$0xff]  }
 0x3ad   : > { %v2242_v49 = vpop.f32.mrf.mxu0  ;;  %3867 = vmatprep.subr.bf16.mxu1 %v5230_v4 }
 0x3ae   : > { %v2243_v50 = vadd.f32 %v2242_v49, %v5182_v29  ;;  %2591 = vmatprep.mubr.bf16.mxu1 %v2300_v10  ;;  %v2282_v20 = vmax.f32 %v2241_v0, 0.0  ;;  %v5236_v10 = vld [vmem:[#allocation16 + $0x30] sm:$0xff]  }
 0x3af   : > { %v2244_v14 = vpop.f32.mrf.mxu0  ;;  %2592 = vmatmul.mubr.bf16.gmra.mxu1 %v2299_v12  ;;  %v5238_v12 = vld [vmem:[#allocation16 + $0x68] sm:$0xff]  }
 0x3b0   : > { %v2245_v16 = vadd.f32 %v2244_v14, %v5179_v27  ;;  %v2283_v18 = vmax.f32 %v2243_v50, 0.0  ;;  %3875 = vmatpush3.bf16.msra.mxu1 %v5236_v10 }
 0x3b1   : > { %v2248_v19 = vpop.f32.mrf.mxu0  ;;  %3868 = vmatprep.subr.bf16.mxu1 %v5238_v12 }
 0x3b2   : > { %v2284_v21 = vmax.f32 %v2245_v16, 0.0  ;;  %v2301_v26 = vpack.c.bf16 %v2283_v18, %v2281_v24  ;;  %v2249_v35 = vadd.f32 %v2248_v19, %v5182_v29  ;;  %v5252_v19 = vld [vmem:[#allocation16 + $0x20] sm:$0xff]  }
 0x3b3   : > { %v2250_v25 = vpop.f32.mrf.mxu0 }
 0x3b4   : > { %v2302_v9 = vpack.c.bf16 %v2284_v21, %v2282_v20  ;;  %v2251_v31 = vadd.f32 %v2250_v25, %v5179_v27  ;;  %v2285_v43 = vmax.f32 %v2249_v35, 0.0  ;;  %3876 = vmatpush3.bf16.msra.mxu1 %v5244_v13  ;;  %v5254_v21 = vld [vmem:[#allocation16 + $0x58] sm:$0xff]  }
 0x3b5   : > { %v2252_v30 = vpop.f32.mrf.mxu0  ;;  %3869 = vmatprep.subr.bf16.mxu1 %v5246_v15 }
 0x3b6   : > { %v2253_v34 = vadd.f32 %v2252_v30, %v5182_v29  ;;  %2601 = vmatprep.mubr.bf16.mxu1 %v2302_v9  ;;  %v2286_v41 = vmax.f32 %v2251_v31, 0.0  ;;  %v4272_v29 = vld [vmem:[#allocation14 + $0xc4] ss:$8 sps:$4 sm:$0xff]   ;;  %v5260_v9 = vld [vmem:[#allocation16 + $0x18] sm:$0xff]  }
 0x3b7   : > { %v2254_v36 = vpop.f32.mrf.mxu0  ;;  %2602 = vmatmul.mubr.bf16.gmra.mxu1 %v2301_v26  ;;  %2896 = vmatprep.subr.bf16.mxu0 %v4272_v29 }
 0x3b8   : > { %v2255_v38 = vadd.f32 %v2254_v36, %v5179_v27  ;;  %v2287_v40 = vmax.f32 %v2253_v34, 0.0  ;;  %2897 = vmatpush2.bf16.msra.mxu0 %v4270_v48  ;;  %v4275_v27 = vld [vmem:[#allocation14 + $0xb4] ss:$8 sps:$4 sm:$0xff]   ;;  %3877 = vmatpush3.bf16.msra.mxu1 %v5252_v19 }
 0x3b9   : > { %2898 = vmatprep.subr.bf16.mxu0 %v4275_v27  ;;  %3870 = vmatprep.subr.bf16.mxu1 %v5254_v21 }
 0x3ba   : > { %v2288_v42 = vmax.f32 %v2255_v38, 0.0  ;;  %v2303_v47 = vpack.c.bf16 %v2287_v40, %v2285_v43 }
 0x3bc   : > { %v2304_v45 = vpack.c.bf16 %v2288_v42, %v2286_v41  ;;  %2899 = vmatpush2.bf16.msra.mxu0 %v4273_v51  ;;  %3878 = vmatpush3.bf16.msra.mxu1 %v5260_v9 }
 0x3bd   : > { %2900 = vmatprep.subr.bf16.mxu0 %v4278_v52 }
 0x3be   : > { %2611 = vmatprep.mubr.bf16.mxu1 %v2304_v45 }
 0x3bf   : > { %2612 = vmatmul.mubr.bf16.gmra.mxu1 %v2303_v47 }
 0x3c0   : > { %2901 = vmatpush2.bf16.msra.mxu0 %v4276_v53 }
 0x3c1   : > { %2902 = vmatprep.subr.bf16.mxu0 %v4281_v54 }
 0x3c4   : > { %2903 = vmatpush2.bf16.msra.mxu0 %v4279_v55 }
 0x3c5   : > { %2904 = vmatprep.subr.bf16.mxu0 %v4284_v56 }
 0x3c8   : > { %2905 = vmatpush2.bf16.msra.mxu0 %v4282_v57 }
 0x3c9   : > { %3802 = vmatprep.subr.bf16.mxu0 %v4285_v63 }
 0x407   : > { %v3754_v58 = vpop.f32.mrf.mxu1 }
 0x409   : > { %v3755_v60 = vpop.f32.mrf.mxu1 }
 0x40a   : > { %v3756_v61 = vadd.f32 %v3755_v60, %v3754_v58 }
 0x40b   : > { %v3757_v62 = vpop.f32.mrf.mxu1 }
 0x40c   : > { %v1958_v33 = vadd.f32 %v3756_v61, %v5220_v59 }
 0x40d   : > { %v3758_v32 = vpop.f32.mrf.mxu1 }
 0x40e   : > { %2020 = vst [vmem:[%s5225_s23] sm:$0xff] %v1958_v33  ;;  %v3759_v1 = vadd.f32 %v3758_v32, %v3757_v62 }
 0x40f   : > { %v3760_v3 = vpop.f32.mrf.mxu1 }
 0x410   : > { %v1961_v5 = vadd.f32 %v3759_v1, %v5220_v59 }
 0x411   : > { %v3761_v6 = vpop.f32.mrf.mxu1 }
 0x412   : > { %2021 = vst [vmem:[%s5225_s23 + $0x8] sm:$0xff] %v1961_v5  ;;  %v3762_v7 = vadd.f32 %v3761_v6, %v3760_v3 }
 0x413   : > { %v3763_v11 = vpop.f32.mrf.mxu1 }
 0x414   : > { %v1966_v49 = vadd.f32 %v3762_v7, %v5220_v59 }
 0x415   : > { %v3764_v0 = vpop.f32.mrf.mxu1 }
 0x416   : > { %2022 = vst [vmem:[%s5225_s23 + $0x10] sm:$0xff] %v1966_v49  ;;  %v3765_v50 = vadd.f32 %v3764_v0, %v3763_v11  ;;  %v2337_v11 = vld [vmem:[%s5518_s12] sm:$0x3] }
 0x417   : > { %v3766_v14 = vpop.f32.mrf.mxu1 }
 0x418   : > { %v1969_v16 = vadd.f32 %v3765_v50, %v5220_v59  ;;  %v5288_v50 = vrot.slane %v2337_v11, %v5032_v22 }
 0x419   : > { %v3767_v17 = vpop.f32.mrf.mxu1 }
 0x41a   : > { %2023 = vst [vmem:[%s5225_s23 + $0x18] sm:$0xff] %v1969_v16  ;;  %v3768_v18 = vadd.f32 %v3767_v17, %v3766_v14  ;;  %v5291_v14 = vrot.slane %v2337_v11, %v5034_v23 }
 0x41b   : > { %v3769_v20 = vpop.f32.mrf.mxu1 }
 0x41c   : > { %v1974_v24 = vadd.f32 %v3768_v18, %v5220_v59 }
 0x41d   : > { %v3770_v25 = vpop.f32.mrf.mxu1 }
 0x41e   : > { %2024 = vst [vmem:[%s5225_s23 + $0x20] sm:$0xff] %v1974_v24  ;;  %v3771_v28 = vadd.f32 %v3770_v25, %v3769_v20 }
 0x41f   : > { %v3772_v8 = vpop.f32.mrf.mxu1 }
 0x420   : > { %v1977_v26 = vadd.f32 %v3771_v28, %v5220_v59 }
 0x421   : > { %v3773_v30 = vpop.f32.mrf.mxu1 }
 0x422   : > { %2025 = vst [vmem:[%s5225_s23 + $0x28] sm:$0xff] %v1977_v26  ;;  %v3774_v31 = vadd.f32 %v3773_v30, %v3772_v8 }
 0x423   : > { %v3775_v34 = vpop.f32.mrf.mxu1 }
 0x424   : > { %v1982_v35 = vadd.f32 %v3774_v31, %v5220_v59 }
 0x425   : > { %v3776_v36 = vpop.f32.mrf.mxu1 }
 0x426   : > { %2026 = vst [vmem:[%s5225_s23 + $0x30] sm:$0xff] %v1982_v35  ;;  %v3777_v37 = vadd.f32 %v3776_v36, %v3775_v34 }
 0x427   : > { %v3778_v38 = vpop.f32.mrf.mxu1 }
 0x428   : > { %v1985_v39 = vadd.f32 %v3777_v37, %v5220_v59 }
 0x429   : > { %v3779_v40 = vpop.f32.mrf.mxu1 }
 0x42a   : > { %2027 = vst [vmem:[%s5225_s23 + $0x38] sm:$0xff] %v1985_v39  ;;  %v3780_v41 = vadd.f32 %v3779_v40, %v3778_v38 }
 0x42b   : > { %v3781_v42 = vpop.f32.mrf.mxu1 }
 0x42c   : > { %v1990_v43 = vadd.f32 %v3780_v41, %v5220_v59 }
 0x42d   : > { %v3782_v44 = vpop.f32.mrf.mxu1 }
 0x42e   : > { %2028 = vst [vmem:[%s5225_s23 + $0x40] sm:$0xff] %v1990_v43  ;;  %v3783_v45 = vadd.f32 %v3782_v44, %v3781_v42 }
 0x42f   : > { %v3784_v46 = vpop.f32.mrf.mxu1 }
 0x430   : > { %v1993_v47 = vadd.f32 %v3783_v45, %v5220_v59 }
 0x431   : > { %v3785_v29 = vpop.f32.mrf.mxu1 }
 0x432   : > { %2029 = vst [vmem:[%s5225_s23 + $0x48] sm:$0xff] %v1993_v47  ;;  %v3786_v48 = vadd.f32 %v3785_v29, %v3784_v46 }
 0x433   : > { %v3787_v27 = vpop.f32.mrf.mxu1 }
 0x434   : > { %v1998_v51 = vadd.f32 %v3786_v48, %v5220_v59 }
 0x435   : > { %v3788_v52 = vpop.f32.mrf.mxu1 }
 0x436   : > { %2030 = vst [vmem:[%s5225_s23 + $0x50] sm:$0xff] %v1998_v51  ;;  %v3789_v53 = vadd.f32 %v3788_v52, %v3787_v27 }
 0x437   : > { %v3790_v54 = vpop.f32.mrf.mxu1 }
 0x438   : > { %v2001_v55 = vadd.f32 %v3789_v53, %v5220_v59 }
 0x439   : > { %v3791_v56 = vpop.f32.mrf.mxu1 }
 0x43a   : > { %2031 = vst [vmem:[%s5225_s23 + $0x58] sm:$0xff] %v2001_v55  ;;  %v3792_v57 = vadd.f32 %v3791_v56, %v3790_v54 }
 0x43b   : > { %v3793_v58 = vpop.f32.mrf.mxu1 }
 0x43c   : > { %v2006_v60 = vadd.f32 %v3792_v57, %v5220_v59 }
 0x43d   : > { %v3794_v61 = vpop.f32.mrf.mxu1 }
 0x43e   : > { %2032 = vst [vmem:[%s5225_s23 + $0x60] sm:$0xff] %v2006_v60  ;;  %v3795_v62 = vadd.f32 %v3794_v61, %v3793_v58 }
 0x43f   : > { %v3796_v33 = vpop.f32.mrf.mxu1 }
 0x440   : > { %v2009_v32 = vadd.f32 %v3795_v62, %v5220_v59 }
 0x441   : > { %v3797_v63 = vpop.f32.mrf.mxu1 }
 0x442   : > { %2033 = vst [vmem:[%s5225_s23 + $0x68] sm:$0xff] %v2009_v32  ;;  %v3798_v1 = vadd.f32 %v3797_v63, %v3796_v33 }
 0x443   : > { %v3799_v3 = vpop.f32.mrf.mxu1 }
 0x444   : > { %v2014_v5 = vadd.f32 %v3798_v1, %v5220_v59 }
 0x445   : > { %v3800_v6 = vpop.f32.mrf.mxu1 }
 0x446   : > { %2034 = vst [vmem:[%s5225_s23 + $0x70] sm:$0xff] %v2014_v5  ;;  %v3801_v7 = vadd.f32 %v3800_v6, %v3799_v3 }
 0x447   : > { %v2543_v49 = vpop.f32.mrf.mxu1 }
 0x448   : > { %v2017_v0 = vadd.f32 %v3801_v7, %v5220_v59  ;;  %v2544_v24 = vadd.f32 %v2543_v49, %v5291_v14 }
 0x449   : > { %v2545_v16 = vpop.f32.mrf.mxu1 }
 0x44a   : > { %2035 = vst [vmem:[%s5225_s23 + $0x78] sm:$0xff] %v2017_v0  ;;  %v2546_v18 = vadd.f32 %v2545_v16, %v5288_v50  ;;  %v2622_v31 = vmax.f32 %v2544_v24, 0.0  ;;  %s4549_s23 = scalar_lea.vmem %s4548_s5, 4096 }
 0x44b   : > { %v2547_v17 = vpop.f32.mrf.mxu1  ;;  %p4551_p3 = scmp.lt.s32.totalorder %s4549_s23, %s4543_s15 }
 0x44c   : > { %v2548_v20 = vadd.f32 %v2547_v17, %v5291_v14  ;;  %v2623_v26 = vmax.f32 %v2546_v18, 0.0 }
 0x44d   : > { %v2549_v25 = vpop.f32.mrf.mxu1  ;;  %p4552_p6 = por %p4551_p3, %p4550_p1 }
 0x44e   : > { %v2550_v28 = vadd.f32 %v2549_v25, %v5288_v50  ;;  %v2624_v8 = vmax.f32 %v2548_v20, 0.0 }
 0x44f   : > { %v2553_v59 = vpop.f32.mrf.mxu1  ;;  %p4553_p2 = pnand %p4552_p6, %p4546_p9 }
 0x450   : > { %v2625_v30 = vmax.f32 %v2550_v28, 0.0  ;;  %v2654_v36 = vpack.c.bf16 %v2624_v8, %v2622_v31  ;;  %v2554_v40 = vadd.f32 %v2553_v59, %v5291_v14 }
 0x451   : > { %v2555_v34 = vpop.f32.mrf.mxu1 }
 0x452   : > { %v2655_v35 = vpack.c.bf16 %v2625_v30, %v2623_v26  ;;  %v2556_v38 = vadd.f32 %v2555_v34, %v5288_v50  ;;  %v2626_v47 = vmax.f32 %v2554_v40, 0.0 }
 0x453   : > { %v2557_v37 = vpop.f32.mrf.mxu1 }
 0x454   : > { %v2558_v39 = vadd.f32 %v2557_v37, %v5291_v14  ;;  %2906 = vmatprep.mubr.bf16.mxu0 %v2655_v35  ;;  %v2627_v45 = vmax.f32 %v2556_v38, 0.0 }
 0x455   : > { %v2559_v41 = vpop.f32.mrf.mxu1  ;;  %2907 = vmatmul.mubr.bf16.vlgmr.msra.gmra.mxu0 %v2654_v36 }
 0x456   : > { %v2560_v42 = vadd.f32 %v2559_v41, %v5288_v50  ;;  %3803 = vmatpush3.bf16.msra.mxu0 %v5228_v2  ;;  %v2628_v43 = vmax.f32 %v2558_v39, 0.0 }
 0x457   : > { %v2563_v44 = vpop.f32.mrf.mxu1  ;;  %3804 = vmatprep.subr.bf16.mxu0 %v5230_v4 }
 0x458   : > { %v2629_v46 = vmax.f32 %v2560_v42, 0.0  ;;  %v2656_v27 = vpack.c.bf16 %v2628_v43, %v2626_v47  ;;  %v2564_v2 = vadd.f32 %v2563_v44, %v5291_v14 }
 0x459   : > { %v2565_v29 = vpop.f32.mrf.mxu1 }
 0x45a   : > { %v2657_v48 = vpack.c.bf16 %v2629_v46, %v2627_v45  ;;  %3805 = vmatpush3.bf16.msra.mxu0 %v5236_v10  ;;  %v2566_v52 = vadd.f32 %v2565_v29, %v5288_v50 }
 0x45b   : > { %v2567_v51 = vpop.f32.mrf.mxu1  ;;  %3806 = vmatprep.subr.bf16.mxu0 %v5238_v12  ;;  %v2630_v12 = vmax.f32 %v2564_v2, 0.0 }
 0x45c   : > { %v2568_v53 = vadd.f32 %v2567_v51, %v5291_v14  ;;  %2916 = vmatprep.mubr.bf16.mxu0 %v2657_v48  ;;  %v2631_v10 = vmax.f32 %v2566_v52, 0.0 }
 0x45d   : > { %v2569_v54 = vpop.f32.mrf.mxu1  ;;  %2917 = vmatmul.mubr.bf16.gmra.mxu0 %v2656_v27 }
 0x45e   : > { %v2570_v4 = vadd.f32 %v2569_v54, %v5288_v50  ;;  %3807 = vmatpush3.bf16.msra.mxu0 %v5244_v13  ;;  %v2632_v55 = vmax.f32 %v2568_v53, 0.0 }
 0x45f   : > { %v2573_v56 = vpop.f32.mrf.mxu1  ;;  %3808 = vmatprep.subr.bf16.mxu0 %v5246_v15 }
 0x460   : > { %v2633_v57 = vmax.f32 %v2570_v4, 0.0  ;;  %v2658_v61 = vpack.c.bf16 %v2632_v55, %v2630_v12  ;;  %v2574_v13 = vadd.f32 %v2573_v56, %v5291_v14 }
 0x461   : > { %v2575_v58 = vpop.f32.mrf.mxu1 }
 0x462   : > { %v2659_v60 = vpack.c.bf16 %v2633_v57, %v2631_v10  ;;  %3809 = vmatpush3.bf16.msra.mxu0 %v5252_v19  ;;  %v2576_v33 = vadd.f32 %v2575_v58, %v5288_v50  ;;  %v2634_v6 = vmax.f32 %v2574_v13, 0.0 }
 0x463   : > { %v2577_v62 = vpop.f32.mrf.mxu1  ;;  %3810 = vmatprep.subr.bf16.mxu0 %v5254_v21 }
 0x464   : > { %v2578_v32 = vadd.f32 %v2577_v62, %v5291_v14  ;;  %2926 = vmatprep.mubr.bf16.mxu0 %v2659_v60  ;;  %v2635_v19 = vmax.f32 %v2576_v33, 0.0 }
 0x465   : > { %v2579_v63 = vpop.f32.mrf.mxu1  ;;  %2927 = vmatmul.mubr.bf16.gmra.mxu0 %v2658_v61 }
 0x466   : > { %v2580_v15 = vadd.f32 %v2579_v63, %v5288_v50  ;;  %3811 = vmatpush3.bf16.msra.mxu0 %v5260_v9  ;;  %v2636_v1 = vmax.f32 %v2578_v32, 0.0 }
 0x467   : > { %v2583_v3 = vpop.f32.mrf.mxu1 }
 0x468   : > { %v2637_v5 = vmax.f32 %v2580_v15, 0.0  ;;  %v2660_v11 = vpack.c.bf16 %v2636_v1, %v2634_v6  ;;  %v2584_v17 = vadd.f32 %v2583_v3, %v5291_v14  ;;  %v4297_v6 = vld [vmem:[#allocation16 + $0x48] sm:$0xff]  }
 0x469   : > { %v2585_v7 = vpop.f32.mrf.mxu1 }
 0x46a   : > { %v2661_v21 = vpack.c.bf16 %v2637_v5, %v2635_v19  ;;  %v2586_v0 = vadd.f32 %v2585_v7, %v5288_v50  ;;  %v2638_v8 = vmax.f32 %v2584_v17, 0.0  ;;  %v4295_v19 = vld [vmem:[#allocation16 + $0x50] sm:$0xff]   ;;  %v4300_v7 = vld [vmem:[#allocation16] sm:$0xff]  }
 0x46b   : > { %v2587_v49 = vpop.f32.mrf.mxu1  ;;  %v4296_v5 = vld [vmem:[#allocation16 + $0x10] sm:$0xff]   ;;  %3812 = vmatprep.subr.bf16.mxu0 %v4295_v19  ;;  %3871 = vmatprep.subr.bf16.mxu1 %v4295_v19 }
 0x46c   : > { %v2588_v16 = vadd.f32 %v2587_v49, %v5291_v14  ;;  %2936 = vmatprep.mubr.bf16.mxu0 %v2661_v21  ;;  %v2639_v25 = vmax.f32 %v2586_v0, 0.0  ;;  %3813 = vmatpush3.bf16.msra.mxu0 %v4296_v5  ;;  %v2702_v21 = vld [vmem:[%s5520_s14] sm:$0x3] }
 0x46d   : > { %v2589_v18 = vpop.f32.mrf.mxu1  ;;  %2937 = vmatmul.mubr.bf16.gmra.mxu0 %v2660_v11  ;;  %3879 = vmatpush3.bf16.msra.mxu1 %v4296_v5  ;;  %v5339_v49 = vrot.slane %v2702_v21, %v5032_v22  ;;  %v5342_v0 = vrot.slane %v2702_v21, %v5034_v23 }
 0x46e   : > { %v2590_v9 = vadd.f32 %v2589_v18, %v5288_v50  ;;  %v2640_v20 = vmax.f32 %v2588_v16, 0.0  ;;  %3814 = vmatprep.subr.bf16.mxu0 %v4297_v6  ;;  %3872 = vmatprep.subr.bf16.mxu1 %v4297_v6 }
 0x46f   : > { %v2593_v24 = vpop.f32.mrf.mxu1 }
 0x470   : > { %v2641_v28 = vmax.f32 %v2590_v9, 0.0  ;;  %v2662_v30 = vpack.c.bf16 %v2640_v20, %v2638_v8  ;;  %v2594_v36 = vadd.f32 %v2593_v24, %v5291_v14 }
 0x471   : > { %v2595_v59 = vpop.f32.mrf.mxu1 }
 0x472   : > { %v2663_v26 = vpack.c.bf16 %v2641_v28, %v2639_v25  ;;  %v2596_v34 = vadd.f32 %v2595_v59, %v5288_v50  ;;  %v2642_v43 = vmax.f32 %v2594_v36, 0.0 }
 0x473   : > { %v2597_v31 = vpop.f32.mrf.mxu1 }
 0x474   : > { %v2598_v35 = vadd.f32 %v2597_v31, %v5291_v14  ;;  %2946 = vmatprep.mubr.bf16.mxu0 %v2663_v26  ;;  %v2643_v41 = vmax.f32 %v2596_v34, 0.0 }
 0x475   : > { %v2599_v37 = vpop.f32.mrf.mxu1  ;;  %2947 = vmatmul.mubr.bf16.gmra.mxu0 %v2662_v30 }
 0x476   : > { %v2600_v38 = vadd.f32 %v2599_v37, %v5288_v50  ;;  %v2644_v39 = vmax.f32 %v2598_v35, 0.0 }
 0x477   : > { %v2603_v40 = vpop.f32.mrf.mxu1 }
 0x478   : > { %v2645_v42 = vmax.f32 %v2600_v38, 0.0  ;;  %v2664_v46 = vpack.c.bf16 %v2644_v39, %v2642_v43  ;;  %v2604_v27 = vadd.f32 %v2603_v40, %v5291_v14 }
 0x479   : > { %v2605_v44 = vpop.f32.mrf.mxu1 }
 0x47a   : > { %v2665_v45 = vpack.c.bf16 %v2645_v42, %v2643_v41  ;;  %v2606_v29 = vadd.f32 %v2605_v44, %v5288_v50  ;;  %v2646_v55 = vmax.f32 %v2604_v27, 0.0 }
 0x47b   : > { %v2607_v47 = vpop.f32.mrf.mxu1 }
 0x47c   : > { %v2608_v48 = vadd.f32 %v2607_v47, %v5291_v14  ;;  %2956 = vmatprep.mubr.bf16.mxu0 %v2665_v45  ;;  %v2647_v54 = vmax.f32 %v2606_v29, 0.0 }
 0x47d   : > { %v2609_v51 = vpop.f32.mrf.mxu1  ;;  %2957 = vmatmul.mubr.bf16.gmra.mxu0 %v2664_v46 }
 0x47e   : > { %v2610_v52 = vadd.f32 %v2609_v51, %v5288_v50  ;;  %v2648_v53 = vmax.f32 %v2608_v48, 0.0 }
 0x47f   : > { %v2613_v2 = vpop.f32.mrf.mxu1 }
 0x480   : > { %v2649_v4 = vmax.f32 %v2610_v52, 0.0  ;;  %v2666_v57 = vpack.c.bf16 %v2648_v53, %v2646_v55  ;;  %v2614_v61 = vadd.f32 %v2613_v2, %v5291_v14 }
 0x481   : > { %v2615_v56 = vpop.f32.mrf.mxu1 }
 0x482   : > { %v2667_v10 = vpack.c.bf16 %v2649_v4, %v2647_v54  ;;  %v2616_v58 = vadd.f32 %v2615_v56, %v5288_v50  ;;  %v2650_v15 = vmax.f32 %v2614_v61, 0.0 }
 0x483   : > { %v2617_v12 = vpop.f32.mrf.mxu1 }
 0x484   : > { %v2618_v60 = vadd.f32 %v2617_v12, %v5291_v14  ;;  %2966 = vmatprep.mubr.bf16.mxu0 %v2667_v10  ;;  %v2651_v13 = vmax.f32 %v2616_v58, 0.0  ;;  %v4298_v14 = vld [vmem:[#allocation16 + $0x8] sm:$0xff]  }
 0x485   : > { %v2619_v62 = vpop.f32.mrf.mxu1  ;;  %2967 = vmatmul.mubr.bf16.gmra.mxu0 %v2666_v57  ;;  %3880 = vmatpush3.bf16.msra.mxu1 %v4298_v14 }
 0x486   : > { %v2620_v33 = vadd.f32 %v2619_v62, %v5288_v50  ;;  %v2652_v32 = vmax.f32 %v2618_v60, 0.0  ;;  %3815 = vmatpush3.bf16.msra.mxu0 %v4298_v14  ;;  %v4299_v50 = vld [vmem:[#allocation16 + $0x40] sm:$0xff]  }
 0x487   : > { %3816 = vmatprep.subr.bf16.mxu0 %v4299_v50  ;;  %3873 = vmatprep.subr.bf16.mxu1 %v4299_v50 }
 0x488   : > { %v2653_v63 = vmax.f32 %v2620_v33, 0.0  ;;  %v2668_v3 = vpack.c.bf16 %v2652_v32, %v2650_v15 }
 0x489   : > { %3881 = vmatpush3.bf16.msra.mxu1 %v4300_v7 }
 0x48a   : > { %v2669_v1 = vpack.c.bf16 %v2653_v63, %v2651_v13  ;;  %3817 = vmatpush3.bf16.msra.mxu0 %v4300_v7 }
 0x48c   : > { %2976 = vmatprep.mubr.bf16.mxu0 %v2669_v1 }
 0x48d   : > { %2977 = vmatmul.mubr.bf16.gmra.mxu0 %v2668_v3 }
 0x515   : > { %v2908_v11 = vpop.f32.mrf.mxu0 }
 0x516   : > { %v2909_v20 = vadd.f32 %v2908_v11, %v5342_v0 }
 0x517   : > { %v2910_v16 = vpop.f32.mrf.mxu0 }
 0x518   : > { %v2911_v18 = vadd.f32 %v2910_v16, %v5339_v49  ;;  %v2987_v22 = vmax.f32 %v2909_v20, 0.0 }
 0x519   : > { %v2912_v17 = vpop.f32.mrf.mxu0 }
 0x51a   : > { %v2913_v9 = vadd.f32 %v2912_v17, %v5342_v0  ;;  %v2988_v59 = vmax.f32 %v2911_v18, 0.0 }
 0x51b   : > { %v2914_v24 = vpop.f32.mrf.mxu0 }
 0x51c   : > { %v2915_v25 = vadd.f32 %v2914_v24, %v5339_v49  ;;  %v2989_v28 = vmax.f32 %v2913_v9, 0.0 }
 0x51d   : > { %v2918_v8 = vpop.f32.mrf.mxu0 }
 0x51e   : > { %v2990_v26 = vmax.f32 %v2915_v25, 0.0  ;;  %v3019_v23 = vpack.c.bf16 %v2989_v28, %v2987_v22  ;;  %v2919_v37 = vadd.f32 %v2918_v8, %v5342_v0 }
 0x51f   : > { %v2920_v30 = vpop.f32.mrf.mxu0 }
 0x520   : > { %v3020_v31 = vpack.c.bf16 %v2990_v26, %v2988_v59  ;;  %v2921_v35 = vadd.f32 %v2920_v30, %v5339_v49  ;;  %v2991_v44 = vmax.f32 %v2919_v37, 0.0 }
 0x521   : > { %v2922_v34 = vpop.f32.mrf.mxu0 }
 0x522   : > { %v2923_v36 = vadd.f32 %v2922_v34, %v5342_v0  ;;  %3202 = vmatprep.mubr.bf16.mxu0 %v3020_v31  ;;  %v2992_v42 = vmax.f32 %v2921_v35, 0.0 }
 0x523   : > { %v2924_v38 = vpop.f32.mrf.mxu0  ;;  %3203 = vmatmul.mubr.bf16.vlgmr.msra.gmra.mxu0 %v3019_v23 }
 0x524   : > { %v2925_v39 = vadd.f32 %v2924_v38, %v5339_v49  ;;  %v2993_v40 = vmax.f32 %v2923_v36, 0.0 }
 0x525   : > { %v2928_v41 = vpop.f32.mrf.mxu0 }
 0x526   : > { %v2994_v43 = vmax.f32 %v2925_v39, 0.0  ;;  %v3021_v47 = vpack.c.bf16 %v2993_v40, %v2991_v44  ;;  %v2929_v51 = vadd.f32 %v2928_v41, %v5342_v0 }
 0x527   : > { %v2930_v45 = vpop.f32.mrf.mxu0 }
 0x528   : > { %v3022_v46 = vpack.c.bf16 %v2994_v43, %v2992_v42  ;;  %v2931_v48 = vadd.f32 %v2930_v45, %v5339_v49  ;;  %v2995_v56 = vmax.f32 %v2929_v51, 0.0 }
 0x529   : > { %v2932_v29 = vpop.f32.mrf.mxu0 }
 0x52a   : > { %v2933_v27 = vadd.f32 %v2932_v29, %v5342_v0  ;;  %3210 = vmatprep.mubr.bf16.mxu0 %v3022_v46  ;;  %v2996_v4 = vmax.f32 %v2931_v48, 0.0 }
 0x52b   : > { %v2934_v52 = vpop.f32.mrf.mxu0  ;;  %3211 = vmatmul.mubr.bf16.gmra.mxu0 %v3021_v47 }
 0x52c   : > { %v2935_v53 = vadd.f32 %v2934_v52, %v5339_v49  ;;  %v2997_v2 = vmax.f32 %v2933_v27, 0.0 }
 0x52d   : > { %v2938_v54 = vpop.f32.mrf.mxu0 }
 0x52e   : > { %v2998_v55 = vmax.f32 %v2935_v53, 0.0  ;;  %v3023_v12 = vpack.c.bf16 %v2997_v2, %v2995_v56  ;;  %v2939_v62 = vadd.f32 %v2938_v54, %v5342_v0 }
 0x52f   : > { %v2940_v10 = vpop.f32.mrf.mxu0 }
 0x530   : > { %v3024_v57 = vpack.c.bf16 %v2998_v55, %v2996_v4  ;;  %v2941_v60 = vadd.f32 %v2940_v10, %v5339_v49  ;;  %v2999_v3 = vmax.f32 %v2939_v62, 0.0 }
 0x531   : > { %v2942_v58 = vpop.f32.mrf.mxu0 }
 0x532   : > { %v2943_v61 = vadd.f32 %v2942_v58, %v5342_v0  ;;  %3218 = vmatprep.mubr.bf16.mxu1 %v3024_v57  ;;  %v3000_v15 = vmax.f32 %v2941_v60, 0.0 }
 0x533   : > { %v2944_v33 = vpop.f32.mrf.mxu0  ;;  %3219 = vmatmul.mubr.bf16.vlgmr.msra.gmra.mxu1 %v3023_v12 }
 0x534   : > { %v2945_v32 = vadd.f32 %v2944_v33, %v5339_v49  ;;  %v3001_v13 = vmax.f32 %v2943_v61, 0.0 }
 0x535   : > { %v2948_v63 = vpop.f32.mrf.mxu0 }
 0x536   : > { %v3002_v1 = vmax.f32 %v2945_v32, 0.0  ;;  %v3025_v6 = vpack.c.bf16 %v3001_v13, %v2999_v3  ;;  %v2949_v21 = vadd.f32 %v2948_v63, %v5342_v0 }
 0x537   : > { %v2950_v19 = vpop.f32.mrf.mxu0 }
 0x538   : > { %v3026_v5 = vpack.c.bf16 %v3002_v1, %v3000_v15  ;;  %v2951_v50 = vadd.f32 %v2950_v19, %v5339_v49  ;;  %v3003_v24 = vmax.f32 %v2949_v21, 0.0 }
 0x539   : > { %v2952_v14 = vpop.f32.mrf.mxu0 }
 0x53a   : > { %v2953_v7 = vadd.f32 %v2952_v14, %v5342_v0  ;;  %3226 = vmatprep.mubr.bf16.mxu1 %v3026_v5  ;;  %v3004_v9 = vmax.f32 %v2951_v50, 0.0 }
 0x53b   : > { %v2954_v11 = vpop.f32.mrf.mxu0  ;;  %3227 = vmatmul.mubr.bf16.gmra.mxu1 %v3025_v6 }
 0x53c   : > { %v2955_v16 = vadd.f32 %v2954_v11, %v5339_v49  ;;  %v3005_v17 = vmax.f32 %v2953_v7, 0.0 }
 0x53d   : > { %v2958_v18 = vpop.f32.mrf.mxu0 }
 0x53e   : > { %v3006_v20 = vmax.f32 %v2955_v16, 0.0  ;;  %v3027_v8 = vpack.c.bf16 %v3005_v17, %v3003_v24  ;;  %v2959_v30 = vadd.f32 %v2958_v18, %v5342_v0 }
 0x53f   : > { %v2960_v25 = vpop.f32.mrf.mxu0 }
 0x540   : > { %v3028_v28 = vpack.c.bf16 %v3006_v20, %v3004_v9  ;;  %v2961_v26 = vadd.f32 %v2960_v25, %v5339_v49  ;;  %v3007_v38 = vmax.f32 %v2959_v30, 0.0 }
 0x541   : > { %v2962_v59 = vpop.f32.mrf.mxu0 }
 0x542   : > { %v2963_v22 = vadd.f32 %v2962_v59, %v5342_v0  ;;  %3234 = vmatprep.mubr.bf16.mxu1 %v3028_v28  ;;  %v3008_v36 = vmax.f32 %v2961_v26, 0.0 }
 0x543   : > { %v2964_v31 = vpop.f32.mrf.mxu0  ;;  %3235 = vmatmul.mubr.bf16.gmra.mxu1 %v3027_v8 }
 0x544   : > { %v2965_v23 = vadd.f32 %v2964_v31, %v5339_v49  ;;  %v3009_v34 = vmax.f32 %v2963_v22, 0.0 }
 0x545   : > { %v2968_v35 = vpop.f32.mrf.mxu0 }
 0x546   : > { %v3010_v37 = vmax.f32 %v2965_v23, 0.0  ;;  %v3029_v41 = vpack.c.bf16 %v3009_v34, %v3007_v38  ;;  %v2969_v45 = vadd.f32 %v2968_v35, %v5342_v0 }
 0x547   : > { %v2970_v39 = vpop.f32.mrf.mxu0 }
 0x548   : > { %v3030_v40 = vpack.c.bf16 %v3010_v37, %v3008_v36  ;;  %v2971_v43 = vadd.f32 %v2970_v39, %v5339_v49  ;;  %v3011_v52 = vmax.f32 %v2969_v45, 0.0 }
 0x549   : > { %v2972_v42 = vpop.f32.mrf.mxu0 }
 0x54a   : > { %v2973_v44 = vadd.f32 %v2972_v42, %v5342_v0  ;;  %3242 = vmatprep.mubr.bf16.mxu1 %v3030_v40  ;;  %v3012_v27 = vmax.f32 %v2971_v43, 0.0 }
 0x54b   : > { %v2974_v46 = vpop.f32.mrf.mxu0  ;;  %3243 = vmatmul.mubr.bf16.gmra.mxu1 %v3029_v41 }
 0x54c   : > { %v2975_v47 = vadd.f32 %v2974_v46, %v5339_v49  ;;  %v3013_v29 = vmax.f32 %v2973_v44, 0.0 }
 0x54d   : > { %v2978_v48 = vpop.f32.mrf.mxu0 }
 0x54e   : > { %v3014_v51 = vmax.f32 %v2975_v47, 0.0  ;;  %v3031_v54 = vpack.c.bf16 %v3013_v29, %v3011_v52  ;;  %v2979_v10 = vadd.f32 %v2978_v48, %v5342_v0 }
 0x54f   : > { %v2980_v53 = vpop.f32.mrf.mxu0 }
 0x550   : > { %v3032_v2 = vpack.c.bf16 %v3014_v51, %v3012_v27  ;;  %v2981_v55 = vadd.f32 %v2980_v53, %v5339_v49  ;;  %v3015_v62 = vmax.f32 %v2979_v10, 0.0 }
 0x551   : > { %v2982_v4 = vpop.f32.mrf.mxu0 }
 0x552   : > { %v2983_v56 = vadd.f32 %v2982_v4, %v5342_v0  ;;  %3250 = vmatprep.mubr.bf16.mxu1 %v3032_v2  ;;  %v3016_v60 = vmax.f32 %v2981_v55, 0.0 }
 0x553   : > { %v2984_v57 = vpop.f32.mrf.mxu0  ;;  %3251 = vmatmul.mubr.bf16.gmra.mxu1 %v3031_v54 }
 0x554   : > { %v2985_v12 = vadd.f32 %v2984_v57, %v5339_v49  ;;  %v3017_v58 = vmax.f32 %v2983_v56, 0.0 }
 0x556   : > { %v3018_v61 = vmax.f32 %v2985_v12, 0.0  ;;  %v3033_v32 = vpack.c.bf16 %v3017_v58, %v3015_v62 }
 0x558   : > { %v3034_v33 = vpack.c.bf16 %v3018_v61, %v3016_v60 }
 0x55a   : > { %3258 = vmatprep.mubr.bf16.mxu1 %v3034_v33 }
 0x55b   : > { %3259 = vmatmul.mubr.bf16.gmra.mxu1 %v3033_v32 }
 0x55c   : > { %4556 = shalt.err (!%p4553_p2)
}
 0x55d   : > { %s4557_s7 = scalar_lea.hbm %s5383_s17, 2048  ;;  %s4561_s16 = scalar_lea.hbm %s5582_s22, 4096 }
 0x55e   : > { %p4558_p8 = scmp.ne.s32.totalorder %s5383_s17, %s4557_s7  ;;  %p4562_p10 = scmp.lt.s32.totalorder %s5383_s17, %s5582_s22 }
 0x55f   : > { %p4563_p11 = scmp.lt.s32.totalorder %s4561_s16, %s4557_s7 }
 0x560   : > { %p4559_p5 = pnand %p4558_p8, %p5583_p13 }
 0x561   : > { %p4564_p12 = por %p4563_p11, %p4562_p10 }
 0x562   : > { %p4560_p7 = pneg %p4559_p5 }
 0x564   : > { %p4565_p0 = pnand %p4564_p12, %p4560_p7 }
 0x566   : > { %4568 = shalt.err (!%p4565_p0)
}
 0x567   : > { %s4670_s15 = smov 128   ;;  %s4671_s5 = smov 8  }
 0x568   : > { %3916 = dma.vmem_to_hbm [thread:$0]  (%p5583_p13), %s5385_s20, 2048, %s5383_s17, %s3284_s3, %s4670_s15, %s4670_s15, %s4671_s5  }
 0x569   : > { %s5584_s7 = sld [smem:[#allocation37_spill]]  ;;  %s5421_s9 = scalar_lea.vmem [#allocation18], %s3523_s13 }
 0x56a   : > { %s3318_s13 = sshll.u32 %s5421_s9, 4  ;;  %s5585_s20 = sshll.u32 %s4789_s1, 11  ;;  %s5461_s13 = int_to_ptr.vmem [resolvable:$true] %s3318_s13 }
 0x56b   : > { %s5586_s21 = sld [smem:[#allocation39_spill]]  ;;  %s3289_s2 = scalar_lea.sflag [#allocation19], %s4984_s24 }
 0x56c   : > { %s4569_s11 = scalar_lea.vmem %s5461_s13, 2048  ;;  %s4672_s23 = smov [#allocation18]  }
 0x56d   : > { %p4570_p4 = scmp.ne.s32.totalorder %s5461_s13, %s4569_s11 }
 0x56f   : > { %v5416_v0 = vld [vmem:[%s5584_s7] ss:$0 sm:$0xff]  ;;  %p4571_p9 = pnand %p4570_p4, %p5583_p13  ;;  %s4573_s7 = sshll.u32 %s4672_s23, 4  ;;  %s4574_s7 = int_to_ptr.vmem [resolvable:$false] %s4573_s7 }
 0x570   : > { %s4575_s1 = scalar_lea.vmem %s4574_s7, 4096  ;;  %p4576_p3 = scmp.lt.s32.totalorder %s5461_s13, %s4574_s7 }
 0x571   : > { %s5459_s16 = scalar_lea.hbm %s5586_s21, %s5585_s20  ;;  %p4572_p1 = pneg %p4571_p9 }
 0x572   : > { %p4577_p6 = scmp.lt.s32.totalorder %s4575_s1, %s4569_s11 }
 0x574   : > { %p4578_p2 = por %p4577_p6, %p4576_p3 }
 0x576   : > { %p4579_p8 = pnand %p4578_p2, %p4572_p1 }
 0x5e3   : > { %v3818_v49 = vpop.f32.mrf.mxu0 }
 0x5e5   : > { %v3819_v13 = vpop.f32.mrf.mxu0 }
 0x5e6   : > { %v3820_v63 = vadd.f32 %v3819_v13, %v3818_v49 }
 0x5e7   : > { %v3821_v15 = vpop.f32.mrf.mxu0 }
 0x5e8   : > { %v3205_v1 = vadd.f32 %v3820_v63, %v5416_v0 }
 0x5e9   : > { %v3822_v3 = vpop.f32.mrf.mxu0 }
 0x5ea   : > { %3267 = vst [vmem:[%s5421_s9] sm:$0xff] %v3205_v1  ;;  %v3823_v19 = vadd.f32 %v3822_v3, %v3821_v15 }
 0x5eb   : > { %v3824_v5 = vpop.f32.mrf.mxu0 }
 0x5ec   : > { %v3208_v6 = vadd.f32 %v3823_v19, %v5416_v0 }
 0x5ed   : > { %v3825_v14 = vpop.f32.mrf.mxu0 }
 0x5ee   : > { %3268 = vst [vmem:[%s5421_s9 + $0x8] sm:$0xff] %v3208_v6  ;;  %v3826_v50 = vadd.f32 %v3825_v14, %v3824_v5 }
 0x5ef   : > { %v3827_v7 = vpop.f32.mrf.mxu0 }
 0x5f0   : > { %v3213_v21 = vadd.f32 %v3826_v50, %v5416_v0 }
 0x5f1   : > { %v3828_v11 = vpop.f32.mrf.mxu0 }
 0x5f2   : > { %3269 = vst [vmem:[%s5421_s9 + $0x10] sm:$0xff] %v3213_v21  ;;  %v3829_v16 = vadd.f32 %v3828_v11, %v3827_v7 }
 0x5f3   : > { %v3830_v17 = vpop.f32.mrf.mxu1 }
 0x5f4   : > { %v3216_v18 = vadd.f32 %v3829_v16, %v5416_v0 }
 0x5f5   : > { %v3831_v9 = vpop.f32.mrf.mxu1 }
 0x5f6   : > { %3270 = vst [vmem:[%s5421_s9 + $0x18] sm:$0xff] %v3216_v18  ;;  %v3832_v20 = vadd.f32 %v3831_v9, %v3830_v17 }
 0x5f7   : > { %v3833_v24 = vpop.f32.mrf.mxu1 }
 0x5f8   : > { %v3221_v25 = vadd.f32 %v3832_v20, %v5416_v0 }
 0x5f9   : > { %v3834_v28 = vpop.f32.mrf.mxu1 }
 0x5fa   : > { %3271 = vst [vmem:[%s5421_s9 + $0x20] sm:$0xff] %v3221_v25  ;;  %v3835_v8 = vadd.f32 %v3834_v28, %v3833_v24 }
 0x5fb   : > { %v3836_v59 = vpop.f32.mrf.mxu1 }
 0x5fc   : > { %v3224_v26 = vadd.f32 %v3835_v8, %v5416_v0 }
 0x5fd   : > { %v3837_v22 = vpop.f32.mrf.mxu1 }
 0x5fe   : > { %3272 = vst [vmem:[%s5421_s9 + $0x28] sm:$0xff] %v3224_v26  ;;  %v3838_v30 = vadd.f32 %v3837_v22, %v3836_v59 }
 0x5ff   : > { %v3839_v31 = vpop.f32.mrf.mxu1 }
 0x600   : > { %v3229_v23 = vadd.f32 %v3838_v30, %v5416_v0 }
 0x601   : > { %v3840_v34 = vpop.f32.mrf.mxu1 }
 0x602   : > { %3273 = vst [vmem:[%s5421_s9 + $0x30] sm:$0xff] %v3229_v23  ;;  %v3841_v35 = vadd.f32 %v3840_v34, %v3839_v31 }
 0x603   : > { %v3842_v36 = vpop.f32.mrf.mxu1 }
 0x604   : > { %v3232_v37 = vadd.f32 %v3841_v35, %v5416_v0 }
 0x605   : > { %v3843_v38 = vpop.f32.mrf.mxu1 }
 0x606   : > { %3274 = vst [vmem:[%s5421_s9 + $0x38] sm:$0xff] %v3232_v37  ;;  %v3844_v39 = vadd.f32 %v3843_v38, %v3842_v36 }
 0x607   : > { %v3845_v40 = vpop.f32.mrf.mxu1 }
 0x608   : > { %v3237_v41 = vadd.f32 %v3844_v39, %v5416_v0 }
 0x609   : > { %v3846_v42 = vpop.f32.mrf.mxu1 }
 0x60a   : > { %3275 = vst [vmem:[%s5421_s9 + $0x40] sm:$0xff] %v3237_v41  ;;  %v3847_v43 = vadd.f32 %v3846_v42, %v3845_v40 }
 0x60b   : > { %v3848_v44 = vpop.f32.mrf.mxu1 }
 0x60c   : > { %v3240_v45 = vadd.f32 %v3847_v43, %v5416_v0 }
 0x60d   : > { %v3849_v46 = vpop.f32.mrf.mxu1 }
 0x60e   : > { %3276 = vst [vmem:[%s5421_s9 + $0x48] sm:$0xff] %v3240_v45  ;;  %v3850_v47 = vadd.f32 %v3849_v46, %v3848_v44 }
 0x60f   : > { %v3851_v29 = vpop.f32.mrf.mxu1 }
 0x610   : > { %v3245_v48 = vadd.f32 %v3850_v47, %v5416_v0 }
 0x611   : > { %v3852_v27 = vpop.f32.mrf.mxu1 }
 0x612   : > { %3277 = vst [vmem:[%s5421_s9 + $0x50] sm:$0xff] %v3245_v48  ;;  %v3853_v51 = vadd.f32 %v3852_v27, %v3851_v29 }
 0x613   : > { %v3854_v52 = vpop.f32.mrf.mxu1 }
 0x614   : > { %v3248_v53 = vadd.f32 %v3853_v51, %v5416_v0 }
 0x615   : > { %v3855_v2 = vpop.f32.mrf.mxu1 }
 0x616   : > { %3278 = vst [vmem:[%s5421_s9 + $0x58] sm:$0xff] %v3248_v53  ;;  %v3856_v54 = vadd.f32 %v3855_v2, %v3854_v52 }
 0x617   : > { %v3857_v4 = vpop.f32.mrf.mxu1 }
 0x618   : > { %v3253_v55 = vadd.f32 %v3856_v54, %v5416_v0 }
 0x619   : > { %v3858_v56 = vpop.f32.mrf.mxu1 }
 0x61a   : > { %3279 = vst [vmem:[%s5421_s9 + $0x60] sm:$0xff] %v3253_v55  ;;  %v3859_v10 = vadd.f32 %v3858_v56, %v3857_v4 }
 0x61b   : > { %v3860_v57 = vpop.f32.mrf.mxu1 }
 0x61c   : > { %v3256_v12 = vadd.f32 %v3859_v10, %v5416_v0 }
 0x61d   : > { %v3861_v58 = vpop.f32.mrf.mxu1 }
 0x61e   : > { %3280 = vst [vmem:[%s5421_s9 + $0x68] sm:$0xff] %v3256_v12  ;;  %v3862_v60 = vadd.f32 %v3861_v58, %v3860_v57 }
 0x61f   : > { %v3863_v61 = vpop.f32.mrf.mxu1 }
 0x620   : > { %v3261_v62 = vadd.f32 %v3862_v60, %v5416_v0 }
 0x621   : > { %v3864_v33 = vpop.f32.mrf.mxu1 }
 0x622   : > { %3281 = vst [vmem:[%s5421_s9 + $0x70] sm:$0xff] %v3261_v62  ;;  %v3865_v32 = vadd.f32 %v3864_v33, %v3863_v61 }
 0x624   : > { %v3264_v49 = vadd.f32 %v3865_v32, %v5416_v0 }
 0x626   : > { %3282 = vst [vmem:[%s5421_s9 + $0x78] sm:$0xff] %v3264_v49 }
 0x627   : > { %4582 = shalt.err (!%p4579_p8)
}
 0x628   : > { %s4583_s9 = scalar_lea.hbm %s5459_s16, 2048  ;;  %s4587_s17 = scalar_lea.hbm %s5586_s21, 4096 }
 0x629   : > { %p4584_p5 = scmp.ne.s32.totalorder %s5459_s16, %s4583_s9  ;;  %p4588_p11 = scmp.lt.s32.totalorder %s5459_s16, %s5586_s21 }
 0x62a   : > { %p4589_p12 = scmp.lt.s32.totalorder %s4587_s17, %s4583_s9 }
 0x62b   : > { %p4585_p7 = pnand %p4584_p5, %p5583_p13 }
 0x62c   : > { %p4590_p0 = por %p4589_p12, %p4588_p11 }
 0x62d   : > { %p4586_p10 = pneg %p4585_p7 }
 0x62f   : > { %p4591_p4 = pnand %p4590_p0, %p4586_p10 }
 0x631   : > { %4594 = shalt.err (!%p4591_p4)
}
 0x632   : > { %3917 = dma.vmem_to_hbm [thread:$0]  (%p5583_p13), %s5461_s13, 2048, %s5459_s16, %s3289_s2, %s4670_s15, %s4670_s15, %s4671_s5  }
 0x633 PF: > { %s3333_s11 = sand.u32 1, %s4641_s27   ;;  %p5587_p9 = scmp.ne.s32.totalorder %s5566_s0, 0 }
 0x634   : > { %p5588_p1 = scmp.ge.s32.totalorder %s4653_s30, 2  ;;  %s3334_s7 = scalar_lea.sflag [#allocation4], %s3333_s11 }
 0x636   : > { %p3950_p3 = pnand %p5588_p1, %p5587_p9 }
 0x638   : > { %p3951_p6 = pneg %p3950_p3 }
 0x63a   : > { %4632 = dma.done.wait (%p3951_p6), %s3334_s7, 2048  }
 0x63b   : > { %4634 = vsyncadd (%p3951_p6), %s3334_s7, 4294965248  ;;  %s3343_s1 = scalar_lea.sflag [#allocation19], %s3333_s11 }
 0x63c   : > { %4636 = dma.done.wait (%p3951_p6), %s3343_s1, 2048  }
 0x63d   : > { %4638 = vsyncadd (%p3951_p6), %s3343_s1, 4294965248  ;;  %p39_p13 = scmp.ge.s32.totalorder %s4909_s25, 4   ;;  %s5589_s27 = smov %s4645_s28 }
 0x63e   : > { %s5590_s28 = smov %s4649_s29  ;;  %s5591_s29 = smov %s4920_s18 }
 0x63f   : > { %s5592_s30 = smov %s4909_s25  ;;  %41 = sbr.rel (!%p39_p13) target bundleno = 25 (0x19), region = 182 }
 0x644   :  { %3348 = vsyncpa [#allocation3], 1 }
 0x645   :  { %3350 = vsyncpa [#allocation3 + $0x1], 1 }
 0x646   :  { %3351 = vsyncpa [#allocation6], 1 }
 0x647   :  { %3352 = vsyncpa [#allocation9], 1 }
 0x648   :  { %3353 = vsyncpa [#allocation12], 1 }
 0x649   :  { %3354 = vsyncpa [#allocation15], 1 }
 0x64a   :  { %3355 = vsyncpa [#allocation4], 1 }
 0x64b   :  { %3357 = vsyncpa [#allocation4 + $0x1], 1 }
 0x64c   :  { %3358 = vsyncpa [#allocation19], 1 }
 0x64d   :  { %3360 = vsyncpa [#allocation19 + $0x1], 1 }

</bundles_post_ra>
